<compile_context>
chip_gen: v6e
topology: v6e:2x2x1
jax: 0.10.0
libtpu: 0.0.40
codegen_flags: <defaults>
</compile_context>

<pallas_src>
import functools

import numpy as np
import jax
import jax.numpy as jnp
from jax.experimental import pallas as pl
from jax.experimental.pallas import tpu as pltpu

BN_EPS = 1e-5
N_CONV = 5
N_BN = 4
L0 = 4  # length after h.view(B, -1, 4)


def _round8(n):
    return -(-n // 8) * 8


# --------------------------------- kernel ---------------------------------

def _decoder_kernel(*refs):
    """refs = (xk, wc, w0, m0, ..., w4, m4, g0, b0, ..., g3, b3, out).

    Activations live as 2-D slabs a = (C, B*L): length in lanes, channels in sublanes.
    """
    f32 = jnp.float32
    bf16 = jnp.bfloat16
    out_ref = refs[-1]
    xk_ref, wc_ref = refs[0], refs[1]
    conv_refs = refs[2:2 + 2 * N_CONV]
    bn_refs = refs[2 + 2 * N_CONV:-1]

    def mm(x, y):
        return jnp.dot(x, y, preferred_element_type=f32)

    # ---- Linear (bias=False), single MXU dot:
    #      a[c, b*L0+l] = sum_z Wc[c, z*L0+l] * kron(x^T, I_L0)[z*L0+l, b*L0+l]
    a = mm(wc_ref[...], xk_ref[...])                          # (C0, B*L0) f32

    # ---- 5x ConvTranspose1d(k=4, s=2, p=1), BN + ReLU fused on the first 4.
    #      out = sum_k (Wk^T @ a) @ Mk  with precomputed 0/1 scatter matrices Mk.
    for i in range(N_CONV):
        w_ref = conv_refs[2 * i]                              # (4*Cp, Cin_p) bf16
        m_ref = conv_refs[2 * i + 1]                          # (4, bl, 2*bl) f32
        cp = w_ref.shape[0] // 4

        t = mm(w_ref[...], a.astype(bf16))                    # (4*Cp, bl) f32, taps stacked
        a = mm(t[0:cp], m_ref[0])                             # (Cp, 2*bl) f32
        for k in range(1, 4):
            a = a + mm(t[k * cp:(k + 1) * cp], m_ref[k])

        if i < N_BN:
            g_ref, b_ref = bn_refs[2 * i], bn_refs[2 * i + 1]
            inv_n = 1.0 / a.shape[1]                          # B * L (PyTorch BN1d stats)
            mean = jnp.sum(a, axis=1, keepdims=True) * inv_n
            var = jnp.sum(a * a, axis=1, keepdims=True) * inv_n - mean * mean
            scale = jax.lax.rsqrt(var + BN_EPS) * g_ref[...]
            a = jnp.maximum((a - mean) * scale + b_ref[...], 0.0)

    out_ref[...] = a                                          # one dense (8, B*128) store


# --------------------------------- wrapper ---------------------------------

@functools.partial(jax.jit, static_argnames=("nc",))
def decoder_forward(packed, x, *, nc):
    """x: (B, nz) -> (B, nc, 128)  (matches PyTorch NCL output)."""
    batch = x.shape[0]
    l_out = L0 * (2 ** N_CONV)

    # kron(x^T, I_4): layout-only expansion so the Linear is one in-kernel MXU dot.
    xk = jnp.kron(x.T, jnp.eye(L0, dtype=x.dtype)).astype(jnp.bfloat16)   # (nz*4, B*4)

    operands = [xk, packed["wc"]]
    for layer in packed["layers"]:
        operands += [layer["w"], layer["m"]]
    for layer in packed["layers"][:N_BN]:
        operands += [layer["g"], layer["b"]]

    cp_last = packed["layers"][-1]["w"].shape[0] // 4
    vmem = lambda: pl.BlockSpec(memory_space=pltpu.MemorySpace.VMEM)
    slab = pl.pallas_call(
        _decoder_kernel,
        out_shape=jax.ShapeDtypeStruct((cp_last, batch * l_out), jnp.float32),
        in_specs=[vmem() for _ in operands],
        out_specs=vmem(),
    )(*operands)

    # (Cp, B*L) lane-dense slab -> PyTorch (B, nc, L); pure layout, handled by XLA.
    return slab[:nc].reshape(nc, batch, l_out).transpose(1, 0, 2)


# ----------------------------- params (standard + packed) -----------------------------

def init_params(key, nc, nz, ngf):
    ks = jax.random.split(key, 1 + N_CONV + 2 * N_BN)
    c0 = ngf * 16
    params = {}
    # nn.Linear(nz, ngf*16*4, bias=False): y = x @ w_lin   (w_lin[z, o] = W_pt[o, z])
    params["w_lin"] = 0.02 * jax.random.normal(ks[0], (nz, c0 * L0), jnp.float32)

    chans = [c0, ngf * 8, ngf * 4, ngf * 2, ngf, nc]
    conv_ws, gammas, betas = [], [], []
    for i in range(N_CONV):
        cin, cout = chans[i], chans[i + 1]
        # PyTorch ConvTranspose1d weight layout: (Cin, Cout, K=4)
        conv_ws.append(0.02 * jax.random.normal(ks[1 + i], (cin, cout, 4), jnp.float32))
        if i < N_BN:
            gammas.append(1.0 + 0.1 * jax.random.normal(ks[1 + N_CONV + 2 * i], (cout,), jnp.float32))
            betas.append(0.1 * jax.random.normal(ks[2 + N_CONV + 2 * i], (cout,), jnp.float32))
    params["conv_ws"] = conv_ws
    params["bn_gammas"] = gammas
    params["bn_betas"] = betas
    return params


def pack_params(p, batch):
    """One-time packing: stacked bf16 tap weights, precomputed scatter matrices, BN cols.

    All constants that depend only on (batch, seq) are built here, never in the kernel.
    Small channel counts (< 8) are zero-padded to 8 so every in-kernel sublane slice is
    8-aligned; padded rows stay exactly zero through conv/BN/ReLU.
    """
    nz = p["w_lin"].shape[0]
    c0 = p["conv_ws"][0].shape[0]

    # Linear: Wc[c, z*L0 + l] = w_lin[z, c*L0 + l]  -> (C0, nz*L0) x (nz*L0, B*L0) dot.
    wc = jnp.transpose(p["w_lin"].reshape(nz, c0, L0), (1, 0, 2)).reshape(c0, nz * L0)

    layers = []
    seq = L0
    cin_p = c0
    for i, w in enumerate(p["conv_ws"]):
        cin, cout, _ = w.shape
        cp = _round8(cout)

        # Per-tap transposed weights Wk^T (cout, cin), zero-padded, stacked along rows.
        wt = jnp.transpose(w, (2, 1, 0))                       # (4, cout, cin)
        wt = jnp.pad(wt, ((0, 0), (0, cp - cout), (0, cin_p - cin)))
        w_stack = wt.reshape(4 * cp, cin_p)                    # rows [k*cp:(k+1)*cp] = Wk^T

        # Scatter matrices: Mk[m, n] = 1 iff n == 2*m + k - 1 within the same batch segment
        # (folds the stride-2 upsample, the neighbour shift and the even/odd interleave).
        bl = batch * seq
        m_pos = np.arange(bl)
        n_pos = np.arange(2 * bl)
        same_b = (m_pos[:, None] // seq) == (n_pos[None, :] // (2 * seq))
        mm_ = (m_pos % seq)[:, None]
        nn_ = (n_pos % (2 * seq))[None, :]
        m_all = np.stack(
            [same_b & (nn_ == 2 * mm_ + k - 1) for k in range(4)]
        ).astype(np.float32)                                   # (4, bl, 2*bl)

        layer = {"w": w_stack.astype(jnp.bfloat16),
                 "m": jnp.asarray(m_all, jnp.float32)}
        if i < N_BN:
            layer["g"] = jnp.pad(p["bn_gammas"][i], (0, cp - cout),
                                 constant_values=1.0).reshape(-1, 1).astype(jnp.float32)
            layer["b"] = jnp.pad(p["bn_betas"][i],
                                 (0, cp - cout)).reshape(-1, 1).astype(jnp.float32)
        layers.append(layer)

        seq *= 2
        cin_p = cp

    return {"wc": wc.astype(jnp.bfloat16), "layers": layers}


# ----------------------------- pure-JAX reference -----------------------------

def reference_forward(params, x):
    h = jnp.dot(x, params["w_lin"], precision=jax.lax.Precision.HIGHEST)
    batch = x.shape[0]
    c0 = params["conv_ws"][0].shape[0]
    h = h.reshape(batch, c0, L0)                               # (B, C, L) like .view
    for i, w in enumerate(params["conv_ws"]):
        # ConvTranspose1d(k=4,s=2,p=1) == dilated conv with flipped, transposed kernel.
        rhs = jnp.transpose(w[:, :, ::-1], (1, 0, 2))          # (Cout, Cin, K)
        h = jax.lax.conv_general_dilated(
            h, rhs, window_strides=(1,), padding=[(2, 2)], lhs_dilation=(2,),
            dimension_numbers=("NCH", "OIH", "NCH"),
            precision=jax.lax.Precision.HIGHEST)
        if i < N_BN:
            g = params["bn_gammas"][i].reshape(1, -1, 1)
            b = params["bn_betas"][i].reshape(1, -1, 1)
            mean = jnp.mean(h, axis=(0, 2), keepdims=True)
            var = jnp.mean(jnp.square(h - mean), axis=(0, 2), keepdims=True)
            h = jnp.maximum((h - mean) * jax.lax.rsqrt(var + BN_EPS) * g + b, 0.0)
    return h


# ----------------------------------- main -----------------------------------

if __name__ == "__main__":
    nc, nz, ngf = 4, 8, 4
    batch = 2

    key = jax.random.PRNGKey(0)
    k_param, k_in = jax.random.split(key)
    params_std = init_params(k_param, nc, nz, ngf)
    packed = pack_params(params_std, batch)                    # packing hoisted out of forward
    x = jax.random.normal(k_in, (batch, nz), jnp.float32)

    out = jax.block_until_ready(decoder_forward(packed, x, nc=nc))

    expected_len = L0 * (2 ** N_CONV)                          # 4 -> 8 -> 16 -> 32 -> 64 -> 128
    assert out.shape == (batch, nc, expected_len), out.shape
    assert bool(jnp.all(jnp.isfinite(out)))

    ref = reference_forward(params_std, x)
    rel_err = float(jnp.max(jnp.abs(out - ref)) / (jnp.max(jnp.abs(ref)) + 1e-8))
    # bf16 MXU inputs with f32 accumulation; observed error is a few 1e-3.
    assert rel_err < 2e-2, rel_err

    print("KERNEL_OK")
</pallas_src>

<mosaic_0001>
module attributes {stable_mosaic.version = 11 : i64} {
  func.func @_decoder_kernel(%arg0: memref<32x8xbf16, #tpu.memory_space<vmem>>, %arg1: memref<64x32xbf16, #tpu.memory_space<vmem>>, %arg2: memref<128x64xbf16, #tpu.memory_space<vmem>>, %arg3: memref<4x8x16xf32, #tpu.memory_space<vmem>>, %arg4: memref<64x32xbf16, #tpu.memory_space<vmem>>, %arg5: memref<4x16x32xf32, #tpu.memory_space<vmem>>, %arg6: memref<32x16xbf16, #tpu.memory_space<vmem>>, %arg7: memref<4x32x64xf32, #tpu.memory_space<vmem>>, %arg8: memref<32x8xbf16, #tpu.memory_space<vmem>>, %arg9: memref<4x64x128xf32, #tpu.memory_space<vmem>>, %arg10: memref<32x8xbf16, #tpu.memory_space<vmem>>, %arg11: memref<4x128x256xf32, #tpu.memory_space<vmem>>, %arg12: memref<32x1xf32, #tpu.memory_space<vmem>>, %arg13: memref<32x1xf32, #tpu.memory_space<vmem>>, %arg14: memref<16x1xf32, #tpu.memory_space<vmem>>, %arg15: memref<16x1xf32, #tpu.memory_space<vmem>>, %arg16: memref<8x1xf32, #tpu.memory_space<vmem>>, %arg17: memref<8x1xf32, #tpu.memory_space<vmem>>, %arg18: memref<8x1xf32, #tpu.memory_space<vmem>>, %arg19: memref<8x1xf32, #tpu.memory_space<vmem>>, %arg20: memref<8x256xf32, #tpu.memory_space<vmem>>) attributes {dimension_semantics = [], scalar_prefetch = 0 : i64, scratch_operands = 0 : i64, tpu.core_type = #tpu.core_type<tc>} {
    %c0 = arith.constant 0 : index
    %c0_0 = arith.constant 0 : index
    %0 = vector.load %arg1[%c0, %c0_0] : memref<64x32xbf16, #tpu.memory_space<vmem>>, vector<64x32xbf16>
    %c0_1 = arith.constant 0 : index
    %c0_2 = arith.constant 0 : index
    %1 = vector.load %arg0[%c0_1, %c0_2] : memref<32x8xbf16, #tpu.memory_space<vmem>>, vector<32x8xbf16>
    %cst = arith.constant dense<0.000000e+00> : vector<64x8xf32>
    %2 = tpu.matmul %0, %1, %cst {dimension_numbers = #tpu.dot_dimension_numbers<[1], [0], [0], [1], [0, 0, 1, 1], [], []>} : vector<64x32xbf16>, vector<32x8xbf16>, vector<64x8xf32> -> vector<64x8xf32>
    %c0_3 = arith.constant 0 : index
    %c0_4 = arith.constant 0 : index
    %3 = vector.load %arg2[%c0_3, %c0_4] : memref<128x64xbf16, #tpu.memory_space<vmem>>, vector<128x64xbf16>
    %4 = arith.truncf %2 : vector<64x8xf32> to vector<64x8xbf16>
    %cst_5 = arith.constant dense<0.000000e+00> : vector<128x8xf32>
    %5 = tpu.matmul %3, %4, %cst_5 {dimension_numbers = #tpu.dot_dimension_numbers<[1], [0], [0], [1], [0, 0, 1, 1], [], []>} : vector<128x64xbf16>, vector<64x8xbf16>, vector<128x8xf32> -> vector<128x8xf32>
    %6 = vector.extract_strided_slice %5 {offsets = [0, 0], sizes = [32, 8], strides = [1, 1]} : vector<128x8xf32> to vector<32x8xf32>
    %c0_6 = arith.constant 0 : index
    %c0_7 = arith.constant 0 : index
    %c0_8 = arith.constant 0 : index
    %7 = vector.load %arg3[%c0_6, %c0_7, %c0_8] : memref<4x8x16xf32, #tpu.memory_space<vmem>>, vector<1x8x16xf32>
    %8 = vector.shape_cast %7 : vector<1x8x16xf32> to vector<8x16xf32>
    %cst_9 = arith.constant dense<0.000000e+00> : vector<32x16xf32>
    %9 = tpu.matmul %6, %8, %cst_9 {dimension_numbers = #tpu.dot_dimension_numbers<[1], [0], [0], [1], [0, 0, 1, 1], [], []>} : vector<32x8xf32>, vector<8x16xf32>, vector<32x16xf32> -> vector<32x16xf32>
    %10 = vector.extract_strided_slice %5 {offsets = [32, 0], sizes = [32, 8], strides = [1, 1]} : vector<128x8xf32> to vector<32x8xf32>
    %c1 = arith.constant 1 : index
    %c0_10 = arith.constant 0 : index
    %c0_11 = arith.constant 0 : index
    %11 = vector.load %arg3[%c1, %c0_10, %c0_11] : memref<4x8x16xf32, #tpu.memory_space<vmem>>, vector<1x8x16xf32>
    %12 = vector.shape_cast %11 : vector<1x8x16xf32> to vector<8x16xf32>
    %cst_12 = arith.constant dense<0.000000e+00> : vector<32x16xf32>
    %13 = tpu.matmul %10, %12, %cst_12 {dimension_numbers = #tpu.dot_dimension_numbers<[1], [0], [0], [1], [0, 0, 1, 1], [], []>} : vector<32x8xf32>, vector<8x16xf32>, vector<32x16xf32> -> vector<32x16xf32>
    %14 = arith.addf %9, %13 : vector<32x16xf32>
    %15 = vector.extract_strided_slice %5 {offsets = [64, 0], sizes = [32, 8], strides = [1, 1]} : vector<128x8xf32> to vector<32x8xf32>
    %c2 = arith.constant 2 : index
    %c0_13 = arith.constant 0 : index
    %c0_14 = arith.constant 0 : index
    %16 = vector.load %arg3[%c2, %c0_13, %c0_14] : memref<4x8x16xf32, #tpu.memory_space<vmem>>, vector<1x8x16xf32>
    %17 = vector.shape_cast %16 : vector<1x8x16xf32> to vector<8x16xf32>
    %cst_15 = arith.constant dense<0.000000e+00> : vector<32x16xf32>
    %18 = tpu.matmul %15, %17, %cst_15 {dimension_numbers = #tpu.dot_dimension_numbers<[1], [0], [0], [1], [0, 0, 1, 1], [], []>} : vector<32x8xf32>, vector<8x16xf32>, vector<32x16xf32> -> vector<32x16xf32>
    %19 = arith.addf %14, %18 : vector<32x16xf32>
    %20 = vector.extract_strided_slice %5 {offsets = [96, 0], sizes = [32, 8], strides = [1, 1]} : vector<128x8xf32> to vector<32x8xf32>
    %c3 = arith.constant 3 : index
    %c0_16 = arith.constant 0 : index
    %c0_17 = arith.constant 0 : index
    %21 = vector.load %arg3[%c3, %c0_16, %c0_17] : memref<4x8x16xf32, #tpu.memory_space<vmem>>, vector<1x8x16xf32>
    %22 = vector.shape_cast %21 : vector<1x8x16xf32> to vector<8x16xf32>
    %cst_18 = arith.constant dense<0.000000e+00> : vector<32x16xf32>
    %23 = tpu.matmul %20, %22, %cst_18 {dimension_numbers = #tpu.dot_dimension_numbers<[1], [0], [0], [1], [0, 0, 1, 1], [], []>} : vector<32x8xf32>, vector<8x16xf32>, vector<32x16xf32> -> vector<32x16xf32>
    %24 = arith.addf %19, %23 : vector<32x16xf32>
    %cst_19 = arith.constant dense<0.000000e+00> : vector<32xf32>
    %25 = vector.multi_reduction <add>, %24, %cst_19 [1] : vector<32x16xf32> to vector<32xf32>
    %26 = vector.shape_cast %25 : vector<32xf32> to vector<32x1xf32>
    %cst_20 = arith.constant 6.250000e-02 : f32
    %27 = vector.broadcast %cst_20 : f32 to vector<32x1xf32>
    %28 = arith.mulf %26, %27 : vector<32x1xf32>
    %29 = arith.mulf %24, %24 : vector<32x16xf32>
    %cst_21 = arith.constant dense<0.000000e+00> : vector<32xf32>
    %30 = vector.multi_reduction <add>, %29, %cst_21 [1] : vector<32x16xf32> to vector<32xf32>
    %31 = vector.shape_cast %30 : vector<32xf32> to vector<32x1xf32>
    %cst_22 = arith.constant 6.250000e-02 : f32
    %32 = vector.broadcast %cst_22 : f32 to vector<32x1xf32>
    %33 = arith.mulf %31, %32 : vector<32x1xf32>
    %34 = arith.mulf %28, %28 : vector<32x1xf32>
    %35 = arith.subf %33, %34 : vector<32x1xf32>
    %cst_23 = arith.constant 9.99999974E-6 : f32
    %36 = vector.broadcast %cst_23 : f32 to vector<32x1xf32>
    %37 = arith.addf %35, %36 : vector<32x1xf32>
    %38 = math.rsqrt %37 : vector<32x1xf32>
    %c0_24 = arith.constant 0 : index
    %c0_25 = arith.constant 0 : index
    %39 = vector.load %arg12[%c0_24, %c0_25] : memref<32x1xf32, #tpu.memory_space<vmem>>, vector<32x1xf32>
    %40 = arith.mulf %38, %39 : vector<32x1xf32>
    %41 = vector.broadcast %28 : vector<32x1xf32> to vector<32x16xf32>
    %42 = arith.subf %24, %41 : vector<32x16xf32>
    %43 = vector.broadcast %40 : vector<32x1xf32> to vector<32x16xf32>
    %44 = arith.mulf %42, %43 : vector<32x16xf32>
    %c0_26 = arith.constant 0 : index
    %c0_27 = arith.constant 0 : index
    %45 = vector.load %arg13[%c0_26, %c0_27] : memref<32x1xf32, #tpu.memory_space<vmem>>, vector<32x1xf32>
    %46 = vector.broadcast %45 : vector<32x1xf32> to vector<32x16xf32>
    %47 = arith.addf %44, %46 : vector<32x16xf32>
    %cst_28 = arith.constant 0.000000e+00 : f32
    %48 = vector.broadcast %cst_28 : f32 to vector<32x16xf32>
    %49 = arith.maximumf %47, %48 : vector<32x16xf32>
    %c0_29 = arith.constant 0 : index
    %c0_30 = arith.constant 0 : index
    %50 = vector.load %arg4[%c0_29, %c0_30] : memref<64x32xbf16, #tpu.memory_space<vmem>>, vector<64x32xbf16>
    %51 = arith.truncf %49 : vector<32x16xf32> to vector<32x16xbf16>
    %cst_31 = arith.constant dense<0.000000e+00> : vector<64x16xf32>
    %52 = tpu.matmul %50, %51, %cst_31 {dimension_numbers = #tpu.dot_dimension_numbers<[1], [0], [0], [1], [0, 0, 1, 1], [], []>} : vector<64x32xbf16>, vector<32x16xbf16>, vector<64x16xf32> -> vector<64x16xf32>
    %53 = vector.extract_strided_slice %52 {offsets = [0, 0], sizes = [16, 16], strides = [1, 1]} : vector<64x16xf32> to vector<16x16xf32>
    %c0_32 = arith.constant 0 : index
    %c0_33 = arith.constant 0 : index
    %c0_34 = arith.constant 0 : index
    %54 = vector.load %arg5[%c0_32, %c0_33, %c0_34] : memref<4x16x32xf32, #tpu.memory_space<vmem>>, vector<1x16x32xf32>
    %55 = vector.shape_cast %54 : vector<1x16x32xf32> to vector<16x32xf32>
    %cst_35 = arith.constant dense<0.000000e+00> : vector<16x32xf32>
    %56 = tpu.matmul %53, %55, %cst_35 {dimension_numbers = #tpu.dot_dimension_numbers<[1], [0], [0], [1], [0, 0, 1, 1], [], []>} : vector<16x16xf32>, vector<16x32xf32>, vector<16x32xf32> -> vector<16x32xf32>
    %57 = vector.extract_strided_slice %52 {offsets = [16, 0], sizes = [16, 16], strides = [1, 1]} : vector<64x16xf32> to vector<16x16xf32>
    %c1_36 = arith.constant 1 : index
    %c0_37 = arith.constant 0 : index
    %c0_38 = arith.constant 0 : index
    %58 = vector.load %arg5[%c1_36, %c0_37, %c0_38] : memref<4x16x32xf32, #tpu.memory_space<vmem>>, vector<1x16x32xf32>
    %59 = vector.shape_cast %58 : vector<1x16x32xf32> to vector<16x32xf32>
    %cst_39 = arith.constant dense<0.000000e+00> : vector<16x32xf32>
    %60 = tpu.matmul %57, %59, %cst_39 {dimension_numbers = #tpu.dot_dimension_numbers<[1], [0], [0], [1], [0, 0, 1, 1], [], []>} : vector<16x16xf32>, vector<16x32xf32>, vector<16x32xf32> -> vector<16x32xf32>
    %61 = arith.addf %56, %60 : vector<16x32xf32>
    %62 = vector.extract_strided_slice %52 {offsets = [32, 0], sizes = [16, 16], strides = [1, 1]} : vector<64x16xf32> to vector<16x16xf32>
    %c2_40 = arith.constant 2 : index
    %c0_41 = arith.constant 0 : index
    %c0_42 = arith.constant 0 : index
    %63 = vector.load %arg5[%c2_40, %c0_41, %c0_42] : memref<4x16x32xf32, #tpu.memory_space<vmem>>, vector<1x16x32xf32>
    %64 = vector.shape_cast %63 : vector<1x16x32xf32> to vector<16x32xf32>
    %cst_43 = arith.constant dense<0.000000e+00> : vector<16x32xf32>
    %65 = tpu.matmul %62, %64, %cst_43 {dimension_numbers = #tpu.dot_dimension_numbers<[1], [0], [0], [1], [0, 0, 1, 1], [], []>} : vector<16x16xf32>, vector<16x32xf32>, vector<16x32xf32> -> vector<16x32xf32>
    %66 = arith.addf %61, %65 : vector<16x32xf32>
    %67 = vector.extract_strided_slice %52 {offsets = [48, 0], sizes = [16, 16], strides = [1, 1]} : vector<64x16xf32> to vector<16x16xf32>
    %c3_44 = arith.constant 3 : index
    %c0_45 = arith.constant 0 : index
    %c0_46 = arith.constant 0 : index
    %68 = vector.load %arg5[%c3_44, %c0_45, %c0_46] : memref<4x16x32xf32, #tpu.memory_space<vmem>>, vector<1x16x32xf32>
    %69 = vector.shape_cast %68 : vector<1x16x32xf32> to vector<16x32xf32>
    %cst_47 = arith.constant dense<0.000000e+00> : vector<16x32xf32>
    %70 = tpu.matmul %67, %69, %cst_47 {dimension_numbers = #tpu.dot_dimension_numbers<[1], [0], [0], [1], [0, 0, 1, 1], [], []>} : vector<16x16xf32>, vector<16x32xf32>, vector<16x32xf32> -> vector<16x32xf32>
    %71 = arith.addf %66, %70 : vector<16x32xf32>
    %cst_48 = arith.constant dense<0.000000e+00> : vector<16xf32>
    %72 = vector.multi_reduction <add>, %71, %cst_48 [1] : vector<16x32xf32> to vector<16xf32>
    %73 = vector.shape_cast %72 : vector<16xf32> to vector<16x1xf32>
    %cst_49 = arith.constant 3.125000e-02 : f32
    %74 = vector.broadcast %cst_49 : f32 to vector<16x1xf32>
    %75 = arith.mulf %73, %74 : vector<16x1xf32>
    %76 = arith.mulf %71, %71 : vector<16x32xf32>
    %cst_50 = arith.constant dense<0.000000e+00> : vector<16xf32>
    %77 = vector.multi_reduction <add>, %76, %cst_50 [1] : vector<16x32xf32> to vector<16xf32>
    %78 = vector.shape_cast %77 : vector<16xf32> to vector<16x1xf32>
    %cst_51 = arith.constant 3.125000e-02 : f32
    %79 = vector.broadcast %cst_51 : f32 to vector<16x1xf32>
    %80 = arith.mulf %78, %79 : vector<16x1xf32>
    %81 = arith.mulf %75, %75 : vector<16x1xf32>
    %82 = arith.subf %80, %81 : vector<16x1xf32>
    %cst_52 = arith.constant 9.99999974E-6 : f32
    %83 = vector.broadcast %cst_52 : f32 to vector<16x1xf32>
    %84 = arith.addf %82, %83 : vector<16x1xf32>
    %85 = math.rsqrt %84 : vector<16x1xf32>
    %c0_53 = arith.constant 0 : index
    %c0_54 = arith.constant 0 : index
    %86 = vector.load %arg14[%c0_53, %c0_54] : memref<16x1xf32, #tpu.memory_space<vmem>>, vector<16x1xf32>
    %87 = arith.mulf %85, %86 : vector<16x1xf32>
    %88 = vector.broadcast %75 : vector<16x1xf32> to vector<16x32xf32>
    %89 = arith.subf %71, %88 : vector<16x32xf32>
    %90 = vector.broadcast %87 : vector<16x1xf32> to vector<16x32xf32>
    %91 = arith.mulf %89, %90 : vector<16x32xf32>
    %c0_55 = arith.constant 0 : index
    %c0_56 = arith.constant 0 : index
    %92 = vector.load %arg15[%c0_55, %c0_56] : memref<16x1xf32, #tpu.memory_space<vmem>>, vector<16x1xf32>
    %93 = vector.broadcast %92 : vector<16x1xf32> to vector<16x32xf32>
    %94 = arith.addf %91, %93 : vector<16x32xf32>
    %cst_57 = arith.constant 0.000000e+00 : f32
    %95 = vector.broadcast %cst_57 : f32 to vector<16x32xf32>
    %96 = arith.maximumf %94, %95 : vector<16x32xf32>
    %c0_58 = arith.constant 0 : index
    %c0_59 = arith.constant 0 : index
    %97 = vector.load %arg6[%c0_58, %c0_59] : memref<32x16xbf16, #tpu.memory_space<vmem>>, vector<32x16xbf16>
    %98 = arith.truncf %96 : vector<16x32xf32> to vector<16x32xbf16>
    %cst_60 = arith.constant dense<0.000000e+00> : vector<32x32xf32>
    %99 = tpu.matmul %97, %98, %cst_60 {dimension_numbers = #tpu.dot_dimension_numbers<[1], [0], [0], [1], [0, 0, 1, 1], [], []>} : vector<32x16xbf16>, vector<16x32xbf16>, vector<32x32xf32> -> vector<32x32xf32>
    %100 = vector.extract_strided_slice %99 {offsets = [0, 0], sizes = [8, 32], strides = [1, 1]} : vector<32x32xf32> to vector<8x32xf32>
    %c0_61 = arith.constant 0 : index
    %c0_62 = arith.constant 0 : index
    %c0_63 = arith.constant 0 : index
    %101 = vector.load %arg7[%c0_61, %c0_62, %c0_63] : memref<4x32x64xf32, #tpu.memory_space<vmem>>, vector<1x32x64xf32>
    %102 = vector.shape_cast %101 : vector<1x32x64xf32> to vector<32x64xf32>
    %cst_64 = arith.constant dense<0.000000e+00> : vector<8x64xf32>
    %103 = tpu.matmul %100, %102, %cst_64 {dimension_numbers = #tpu.dot_dimension_numbers<[1], [0], [0], [1], [0, 0, 1, 1], [], []>} : vector<8x32xf32>, vector<32x64xf32>, vector<8x64xf32> -> vector<8x64xf32>
    %104 = vector.extract_strided_slice %99 {offsets = [8, 0], sizes = [8, 32], strides = [1, 1]} : vector<32x32xf32> to vector<8x32xf32>
    %c1_65 = arith.constant 1 : index
    %c0_66 = arith.constant 0 : index
    %c0_67 = arith.constant 0 : index
    %105 = vector.load %arg7[%c1_65, %c0_66, %c0_67] : memref<4x32x64xf32, #tpu.memory_space<vmem>>, vector<1x32x64xf32>
    %106 = vector.shape_cast %105 : vector<1x32x64xf32> to vector<32x64xf32>
    %cst_68 = arith.constant dense<0.000000e+00> : vector<8x64xf32>
    %107 = tpu.matmul %104, %106, %cst_68 {dimension_numbers = #tpu.dot_dimension_numbers<[1], [0], [0], [1], [0, 0, 1, 1], [], []>} : vector<8x32xf32>, vector<32x64xf32>, vector<8x64xf32> -> vector<8x64xf32>
    %108 = arith.addf %103, %107 : vector<8x64xf32>
    %109 = vector.extract_strided_slice %99 {offsets = [16, 0], sizes = [8, 32], strides = [1, 1]} : vector<32x32xf32> to vector<8x32xf32>
    %c2_69 = arith.constant 2 : index
    %c0_70 = arith.constant 0 : index
    %c0_71 = arith.constant 0 : index
    %110 = vector.load %arg7[%c2_69, %c0_70, %c0_71] : memref<4x32x64xf32, #tpu.memory_space<vmem>>, vector<1x32x64xf32>
    %111 = vector.shape_cast %110 : vector<1x32x64xf32> to vector<32x64xf32>
    %cst_72 = arith.constant dense<0.000000e+00> : vector<8x64xf32>
    %112 = tpu.matmul %109, %111, %cst_72 {dimension_numbers = #tpu.dot_dimension_numbers<[1], [0], [0], [1], [0, 0, 1, 1], [], []>} : vector<8x32xf32>, vector<32x64xf32>, vector<8x64xf32> -> vector<8x64xf32>
    %113 = arith.addf %108, %112 : vector<8x64xf32>
    %114 = vector.extract_strided_slice %99 {offsets = [24, 0], sizes = [8, 32], strides = [1, 1]} : vector<32x32xf32> to vector<8x32xf32>
    %c3_73 = arith.constant 3 : index
    %c0_74 = arith.constant 0 : index
    %c0_75 = arith.constant 0 : index
    %115 = vector.load %arg7[%c3_73, %c0_74, %c0_75] : memref<4x32x64xf32, #tpu.memory_space<vmem>>, vector<1x32x64xf32>
    %116 = vector.shape_cast %115 : vector<1x32x64xf32> to vector<32x64xf32>
    %cst_76 = arith.constant dense<0.000000e+00> : vector<8x64xf32>
    %117 = tpu.matmul %114, %116, %cst_76 {dimension_numbers = #tpu.dot_dimension_numbers<[1], [0], [0], [1], [0, 0, 1, 1], [], []>} : vector<8x32xf32>, vector<32x64xf32>, vector<8x64xf32> -> vector<8x64xf32>
    %118 = arith.addf %113, %117 : vector<8x64xf32>
    %cst_77 = arith.constant dense<0.000000e+00> : vector<8xf32>
    %119 = vector.multi_reduction <add>, %118, %cst_77 [1] : vector<8x64xf32> to vector<8xf32>
    %120 = vector.shape_cast %119 : vector<8xf32> to vector<8x1xf32>
    %cst_78 = arith.constant 1.562500e-02 : f32
    %121 = vector.broadcast %cst_78 : f32 to vector<8x1xf32>
    %122 = arith.mulf %120, %121 : vector<8x1xf32>
    %123 = arith.mulf %118, %118 : vector<8x64xf32>
    %cst_79 = arith.constant dense<0.000000e+00> : vector<8xf32>
    %124 = vector.multi_reduction <add>, %123, %cst_79 [1] : vector<8x64xf32> to vector<8xf32>
    %125 = vector.shape_cast %124 : vector<8xf32> to vector<8x1xf32>
    %cst_80 = arith.constant 1.562500e-02 : f32
    %126 = vector.broadcast %cst_80 : f32 to vector<8x1xf32>
    %127 = arith.mulf %125, %126 : vector<8x1xf32>
    %128 = arith.mulf %122, %122 : vector<8x1xf32>
    %129 = arith.subf %127, %128 : vector<8x1xf32>
    %cst_81 = arith.constant 9.99999974E-6 : f32
    %130 = vector.broadcast %cst_81 : f32 to vector<8x1xf32>
    %131 = arith.addf %129, %130 : vector<8x1xf32>
    %132 = math.rsqrt %131 : vector<8x1xf32>
    %c0_82 = arith.constant 0 : index
    %c0_83 = arith.constant 0 : index
    %133 = vector.load %arg16[%c0_82, %c0_83] : memref<8x1xf32, #tpu.memory_space<vmem>>, vector<8x1xf32>
    %134 = arith.mulf %132, %133 : vector<8x1xf32>
    %135 = vector.broadcast %122 : vector<8x1xf32> to vector<8x64xf32>
    %136 = arith.subf %118, %135 : vector<8x64xf32>
    %137 = vector.broadcast %134 : vector<8x1xf32> to vector<8x64xf32>
    %138 = arith.mulf %136, %137 : vector<8x64xf32>
    %c0_84 = arith.constant 0 : index
    %c0_85 = arith.constant 0 : index
    %139 = vector.load %arg17[%c0_84, %c0_85] : memref<8x1xf32, #tpu.memory_space<vmem>>, vector<8x1xf32>
    %140 = vector.broadcast %139 : vector<8x1xf32> to vector<8x64xf32>
    %141 = arith.addf %138, %140 : vector<8x64xf32>
    %cst_86 = arith.constant 0.000000e+00 : f32
    %142 = vector.broadcast %cst_86 : f32 to vector<8x64xf32>
    %143 = arith.maximumf %141, %142 : vector<8x64xf32>
    %c0_87 = arith.constant 0 : index
    %c0_88 = arith.constant 0 : index
    %144 = vector.load %arg8[%c0_87, %c0_88] : memref<32x8xbf16, #tpu.memory_space<vmem>>, vector<32x8xbf16>
    %145 = arith.truncf %143 : vector<8x64xf32> to vector<8x64xbf16>
    %cst_89 = arith.constant dense<0.000000e+00> : vector<32x64xf32>
    %146 = tpu.matmul %144, %145, %cst_89 {dimension_numbers = #tpu.dot_dimension_numbers<[1], [0], [0], [1], [0, 0, 1, 1], [], []>} : vector<32x8xbf16>, vector<8x64xbf16>, vector<32x64xf32> -> vector<32x64xf32>
    %147 = vector.extract_strided_slice %146 {offsets = [0, 0], sizes = [8, 64], strides = [1, 1]} : vector<32x64xf32> to vector<8x64xf32>
    %c0_90 = arith.constant 0 : index
    %c0_91 = arith.constant 0 : index
    %c0_92 = arith.constant 0 : index
    %148 = vector.load %arg9[%c0_90, %c0_91, %c0_92] : memref<4x64x128xf32, #tpu.memory_space<vmem>>, vector<1x64x128xf32>
    %149 = vector.shape_cast %148 : vector<1x64x128xf32> to vector<64x128xf32>
    %cst_93 = arith.constant dense<0.000000e+00> : vector<8x128xf32>
    %150 = tpu.matmul %147, %149, %cst_93 {dimension_numbers = #tpu.dot_dimension_numbers<[1], [0], [0], [1], [0, 0, 1, 1], [], []>} : vector<8x64xf32>, vector<64x128xf32>, vector<8x128xf32> -> vector<8x128xf32>
    %151 = vector.extract_strided_slice %146 {offsets = [8, 0], sizes = [8, 64], strides = [1, 1]} : vector<32x64xf32> to vector<8x64xf32>
    %c1_94 = arith.constant 1 : index
    %c0_95 = arith.constant 0 : index
    %c0_96 = arith.constant 0 : index
    %152 = vector.load %arg9[%c1_94, %c0_95, %c0_96] : memref<4x64x128xf32, #tpu.memory_space<vmem>>, vector<1x64x128xf32>
    %153 = vector.shape_cast %152 : vector<1x64x128xf32> to vector<64x128xf32>
    %cst_97 = arith.constant dense<0.000000e+00> : vector<8x128xf32>
    %154 = tpu.matmul %151, %153, %cst_97 {dimension_numbers = #tpu.dot_dimension_numbers<[1], [0], [0], [1], [0, 0, 1, 1], [], []>} : vector<8x64xf32>, vector<64x128xf32>, vector<8x128xf32> -> vector<8x128xf32>
    %155 = arith.addf %150, %154 : vector<8x128xf32>
    %156 = vector.extract_strided_slice %146 {offsets = [16, 0], sizes = [8, 64], strides = [1, 1]} : vector<32x64xf32> to vector<8x64xf32>
    %c2_98 = arith.constant 2 : index
    %c0_99 = arith.constant 0 : index
    %c0_100 = arith.constant 0 : index
    %157 = vector.load %arg9[%c2_98, %c0_99, %c0_100] : memref<4x64x128xf32, #tpu.memory_space<vmem>>, vector<1x64x128xf32>
    %158 = vector.shape_cast %157 : vector<1x64x128xf32> to vector<64x128xf32>
    %cst_101 = arith.constant dense<0.000000e+00> : vector<8x128xf32>
    %159 = tpu.matmul %156, %158, %cst_101 {dimension_numbers = #tpu.dot_dimension_numbers<[1], [0], [0], [1], [0, 0, 1, 1], [], []>} : vector<8x64xf32>, vector<64x128xf32>, vector<8x128xf32> -> vector<8x128xf32>
    %160 = arith.addf %155, %159 : vector<8x128xf32>
    %161 = vector.extract_strided_slice %146 {offsets = [24, 0], sizes = [8, 64], strides = [1, 1]} : vector<32x64xf32> to vector<8x64xf32>
    %c3_102 = arith.constant 3 : index
    %c0_103 = arith.constant 0 : index
    %c0_104 = arith.constant 0 : index
    %162 = vector.load %arg9[%c3_102, %c0_103, %c0_104] : memref<4x64x128xf32, #tpu.memory_space<vmem>>, vector<1x64x128xf32>
    %163 = vector.shape_cast %162 : vector<1x64x128xf32> to vector<64x128xf32>
    %cst_105 = arith.constant dense<0.000000e+00> : vector<8x128xf32>
    %164 = tpu.matmul %161, %163, %cst_105 {dimension_numbers = #tpu.dot_dimension_numbers<[1], [0], [0], [1], [0, 0, 1, 1], [], []>} : vector<8x64xf32>, vector<64x128xf32>, vector<8x128xf32> -> vector<8x128xf32>
    %165 = arith.addf %160, %164 : vector<8x128xf32>
    %cst_106 = arith.constant dense<0.000000e+00> : vector<8xf32>
    %166 = vector.multi_reduction <add>, %165, %cst_106 [1] : vector<8x128xf32> to vector<8xf32>
    %167 = vector.shape_cast %166 : vector<8xf32> to vector<8x1xf32>
    %cst_107 = arith.constant 7.812500e-03 : f32
    %168 = vector.broadcast %cst_107 : f32 to vector<8x1xf32>
    %169 = arith.mulf %167, %168 : vector<8x1xf32>
    %170 = arith.mulf %165, %165 : vector<8x128xf32>
    %cst_108 = arith.constant dense<0.000000e+00> : vector<8xf32>
    %171 = vector.multi_reduction <add>, %170, %cst_108 [1] : vector<8x128xf32> to vector<8xf32>
    %172 = vector.shape_cast %171 : vector<8xf32> to vector<8x1xf32>
    %cst_109 = arith.constant 7.812500e-03 : f32
    %173 = vector.broadcast %cst_109 : f32 to vector<8x1xf32>
    %174 = arith.mulf %172, %173 : vector<8x1xf32>
    %175 = arith.mulf %169, %169 : vector<8x1xf32>
    %176 = arith.subf %174, %175 : vector<8x1xf32>
    %cst_110 = arith.constant 9.99999974E-6 : f32
    %177 = vector.broadcast %cst_110 : f32 to vector<8x1xf32>
    %178 = arith.addf %176, %177 : vector<8x1xf32>
    %179 = math.rsqrt %178 : vector<8x1xf32>
    %c0_111 = arith.constant 0 : index
    %c0_112 = arith.constant 0 : index
    %180 = vector.load %arg18[%c0_111, %c0_112] : memref<8x1xf32, #tpu.memory_space<vmem>>, vector<8x1xf32>
    %181 = arith.mulf %179, %180 : vector<8x1xf32>
    %182 = vector.broadcast %169 : vector<8x1xf32> to vector<8x128xf32>
    %183 = arith.subf %165, %182 : vector<8x128xf32>
    %184 = vector.broadcast %181 : vector<8x1xf32> to vector<8x128xf32>
    %185 = arith.mulf %183, %184 : vector<8x128xf32>
    %c0_113 = arith.constant 0 : index
    %c0_114 = arith.constant 0 : index
    %186 = vector.load %arg19[%c0_113, %c0_114] : memref<8x1xf32, #tpu.memory_space<vmem>>, vector<8x1xf32>
    %187 = vector.broadcast %186 : vector<8x1xf32> to vector<8x128xf32>
    %188 = arith.addf %185, %187 : vector<8x128xf32>
    %cst_115 = arith.constant 0.000000e+00 : f32
    %189 = vector.broadcast %cst_115 : f32 to vector<8x128xf32>
    %190 = arith.maximumf %188, %189 : vector<8x128xf32>
    %c0_116 = arith.constant 0 : index
    %c0_117 = arith.constant 0 : index
    %191 = vector.load %arg10[%c0_116, %c0_117] : memref<32x8xbf16, #tpu.memory_space<vmem>>, vector<32x8xbf16>
    %192 = arith.truncf %190 : vector<8x128xf32> to vector<8x128xbf16>
    %cst_118 = arith.constant dense<0.000000e+00> : vector<32x128xf32>
    %193 = tpu.matmul %191, %192, %cst_118 {dimension_numbers = #tpu.dot_dimension_numbers<[1], [0], [0], [1], [0, 0, 1, 1], [], []>} : vector<32x8xbf16>, vector<8x128xbf16>, vector<32x128xf32> -> vector<32x128xf32>
    %194 = vector.extract_strided_slice %193 {offsets = [0, 0], sizes = [8, 128], strides = [1, 1]} : vector<32x128xf32> to vector<8x128xf32>
    %c0_119 = arith.constant 0 : index
    %c0_120 = arith.constant 0 : index
    %c0_121 = arith.constant 0 : index
    %195 = vector.load %arg11[%c0_119, %c0_120, %c0_121] : memref<4x128x256xf32, #tpu.memory_space<vmem>>, vector<1x128x256xf32>
    %196 = vector.shape_cast %195 : vector<1x128x256xf32> to vector<128x256xf32>
    %cst_122 = arith.constant dense<0.000000e+00> : vector<8x256xf32>
    %197 = tpu.matmul %194, %196, %cst_122 {dimension_numbers = #tpu.dot_dimension_numbers<[1], [0], [0], [1], [0, 0, 1, 1], [], []>} : vector<8x128xf32>, vector<128x256xf32>, vector<8x256xf32> -> vector<8x256xf32>
    %198 = vector.extract_strided_slice %193 {offsets = [8, 0], sizes = [8, 128], strides = [1, 1]} : vector<32x128xf32> to vector<8x128xf32>
    %c1_123 = arith.constant 1 : index
    %c0_124 = arith.constant 0 : index
    %c0_125 = arith.constant 0 : index
    %199 = vector.load %arg11[%c1_123, %c0_124, %c0_125] : memref<4x128x256xf32, #tpu.memory_space<vmem>>, vector<1x128x256xf32>
    %200 = vector.shape_cast %199 : vector<1x128x256xf32> to vector<128x256xf32>
    %cst_126 = arith.constant dense<0.000000e+00> : vector<8x256xf32>
    %201 = tpu.matmul %198, %200, %cst_126 {dimension_numbers = #tpu.dot_dimension_numbers<[1], [0], [0], [1], [0, 0, 1, 1], [], []>} : vector<8x128xf32>, vector<128x256xf32>, vector<8x256xf32> -> vector<8x256xf32>
    %202 = arith.addf %197, %201 : vector<8x256xf32>
    %203 = vector.extract_strided_slice %193 {offsets = [16, 0], sizes = [8, 128], strides = [1, 1]} : vector<32x128xf32> to vector<8x128xf32>
    %c2_127 = arith.constant 2 : index
    %c0_128 = arith.constant 0 : index
    %c0_129 = arith.constant 0 : index
    %204 = vector.load %arg11[%c2_127, %c0_128, %c0_129] : memref<4x128x256xf32, #tpu.memory_space<vmem>>, vector<1x128x256xf32>
    %205 = vector.shape_cast %204 : vector<1x128x256xf32> to vector<128x256xf32>
    %cst_130 = arith.constant dense<0.000000e+00> : vector<8x256xf32>
    %206 = tpu.matmul %203, %205, %cst_130 {dimension_numbers = #tpu.dot_dimension_numbers<[1], [0], [0], [1], [0, 0, 1, 1], [], []>} : vector<8x128xf32>, vector<128x256xf32>, vector<8x256xf32> -> vector<8x256xf32>
    %207 = arith.addf %202, %206 : vector<8x256xf32>
    %208 = vector.extract_strided_slice %193 {offsets = [24, 0], sizes = [8, 128], strides = [1, 1]} : vector<32x128xf32> to vector<8x128xf32>
    %c3_131 = arith.constant 3 : index
    %c0_132 = arith.constant 0 : index
    %c0_133 = arith.constant 0 : index
    %209 = vector.load %arg11[%c3_131, %c0_132, %c0_133] : memref<4x128x256xf32, #tpu.memory_space<vmem>>, vector<1x128x256xf32>
    %210 = vector.shape_cast %209 : vector<1x128x256xf32> to vector<128x256xf32>
    %cst_134 = arith.constant dense<0.000000e+00> : vector<8x256xf32>
    %211 = tpu.matmul %208, %210, %cst_134 {dimension_numbers = #tpu.dot_dimension_numbers<[1], [0], [0], [1], [0, 0, 1, 1], [], []>} : vector<8x128xf32>, vector<128x256xf32>, vector<8x256xf32> -> vector<8x256xf32>
    %212 = arith.addf %207, %211 : vector<8x256xf32>
    %c0_135 = arith.constant 0 : index
    %c0_136 = arith.constant 0 : index
    %213 = vector.load %arg20[%c0_135, %c0_136] : memref<8x256xf32, #tpu.memory_space<vmem>>, vector<8x256xf32>
    tpu.vector_store %arg20[%c0_135, %c0_136], %212 {strides = array<i32>} : memref<8x256xf32, #tpu.memory_space<vmem>>, vector<8x256xf32>,
    return
  }
}

</mosaic_0001>

<bundles_post_ra>
// kernel: decoder_forward.1
= control target key start
LH: loop header
LB: loop body
LE: loop exit
PB: predicated region body
PF: predicated region fallthrough
CT: control target
= control target key end

     0   :  { %s3966_s0 = inlined_call_operand.vmem [shape: bf16[32,8], index: 0, kind: input, shape index: {}]   ;;  %s3967_s1 = inlined_call_operand.vmem [shape: bf16[64,32], index: 1, kind: input, shape index: {}]   ;;  %s3968_s2 = inlined_call_operand.vmem [shape: bf16[128,64], index: 2, kind: input, shape index: {}]   ;;  %s3969_s3 = inlined_call_operand.hbm [shape: f32[4,8,16], index: 3, kind: input, shape index: {}]   ;;  %s3970_s4 = inlined_call_operand.vmem [shape: bf16[64,32], index: 4, kind: input, shape index: {}]   ;;  %s3971_s5 = inlined_call_operand.vmem [shape: f32[4,16,32], index: 5, kind: input, shape index: {}]   ;;  %s3972_s6 = inlined_call_operand.vmem [shape: bf16[32,16], index: 6, kind: input, shape index: {}]   ;;  %s3973_s7 = inlined_call_operand.vmem [shape: f32[4,32,64], index: 7, kind: input, shape index: {}]   ;;  %s3974_s8 = inlined_call_operand.vmem [shape: bf16[32,8], index: 8, kind: input, shape index: {}]   ;;  %s3975_s9 = inlined_call_operand.vmem [shape: f32[4,64,128], index: 9, kind: input, shape index: {}]   ;;  %s3976_s10 = inlined_call_operand.vmem [shape: bf16[32,8], index: 10, kind: input, shape index: {}]   ;;  %s3977_s11 = inlined_call_operand.hbm [shape: f32[4,128,256], index: 11, kind: input, shape index: {}]   ;;  %s3978_s12 = inlined_call_operand.vmem [shape: f32[32,1], index: 12, kind: input, shape index: {}]   ;;  %s3979_s13 = inlined_call_operand.vmem [shape: f32[32,1], index: 13, kind: input, shape index: {}]   ;;  %s3980_s14 = inlined_call_operand.vmem [shape: f32[16,1], index: 14, kind: input, shape index: {}]   ;;  %s3981_s15 = inlined_call_operand.vmem [shape: f32[16,1], index: 15, kind: input, shape index: {}]   ;;  %s3982_s16 = inlined_call_operand.vmem [shape: f32[8,1], index: 16, kind: input, shape index: {}]   ;;  %s3983_s17 = inlined_call_operand.vmem [shape: f32[8,1], index: 17, kind: input, shape index: {}]   ;;  %s3984_s18 = inlined_call_operand.vmem [shape: f32[8,1], index: 18, kind: input, shape index: {}]   ;;  %s3985_s19 = inlined_call_operand.vmem [shape: f32[8,1], index: 19, kind: input, shape index: {}]   ;;  %s3986_s20 = inlined_call_operand.vmem [shape: f32[8,256], index: 20, kind: output, shape index: {}]  }
   0x1   :  { %3991 = sst [smem:[#allocation8_spill]] %s3966_s0 }
   0x2   :  { %3992 = sst [smem:[#allocation9_spill]] %s3967_s1 }
   0x3   :  { %3993 = sst [smem:[#allocation10_spill]] %s3968_s2 }
   0x4   :  { %3994 = sst [smem:[#allocation11_spill]] %s3969_s3 }
   0x5   :  { %3995 = sst [smem:[#allocation12_spill]] %s3970_s4 }
   0x6   :  { %25 = vsyncpa [#allocation3], 0 }
   0x7   :  { %26 = vsyncpa [#allocation5], 0  ;;  %s3361_s1 = smov [#allocation2]  }
   0x8   :  { %s38_s22 = sshll.u32 %s3361_s1, 4  ;;  %s39_s22 = int_to_ptr.vmem [resolvable:$true] %s38_s22 }
   0x9   :  { %s3325_s23 = scalar_lea.vmem %s39_s22, 512  ;;  %p3330_p1 = scmp.lt.s32.totalorder %s39_s22, %s39_s22 }
   0xa   :  { %p3326_p0 = scmp.ne.s32.totalorder %s39_s22, %s3325_s23  ;;  %p3331_p2 = scmp.lt.s32.totalorder %s3325_s23, %s3325_s23 }
   0xc   :  { %p3332_p3 = por %p3331_p2, %p3330_p1 }
   0xe   :  { %p3333_p4 = pnand %p3332_p3, %p3326_p0 }
  0x10   :  { %3336 = shalt.err (!%p3333_p4)
}
  0x11   :  { %s3362_s24 = smov 128   ;;  %s3363_s2 = smov 8  }
  0x12   :  { %s3996_s26 = sld [smem:[#allocation11_spill]]  ;;  %s3364_s27 = smov [#allocation4]  }
  0x13   :  { %s64_s28 = sshll.u32 %s3364_s27, 4  ;;  %s65_s28 = int_to_ptr.vmem [resolvable:$true] %s64_s28 }
  0x14   :  { %s3345_s4 = scalar_lea.vmem %s65_s28, 16384  ;;  %p3350_p6 = scmp.lt.s32.totalorder %s65_s28, %s65_s28 }
  0x15   :  { %p3346_p5 = scmp.ne.s32.totalorder %s65_s28, %s3345_s4  ;;  %p3351_p7 = scmp.lt.s32.totalorder %s3345_s4, %s3345_s4 }
  0x17   :  { %p3352_p8 = por %p3351_p7, %p3350_p6 }
  0x18   :  { %44 = dma.hbm_to_vmem [thread:$0]  %s3996_s26, 512, %s39_s22, [#allocation3], %s3362_s24, %s3362_s24, %s3363_s2  }
  0x19   :  { %p3353_p9 = pnand %p3352_p8, %p3346_p5 }
  0x1b   :  { %3356 = shalt.err (!%p3353_p9)
}
  0x1c   :  { %s3365_s29 = smov 256   ;;  %s3366_s30 = smov 16  }
  0x1d   :  { %70 = dma.hbm_to_vmem [thread:$0]  %s3977_s11, 16384, %s65_s28, [#allocation5], %s3365_s29, %s3365_s29, %s3366_s30  }
  0x1e   :  { %3357 = dma.done.wait [#allocation3], 512  }
  0x1f   :  { %3358 = vsyncadd [#allocation3], 4294966784 }
  0x20   :  { %3359 = dma.done.wait [#allocation5], 16384  }
  0x21   :  { %3360 = vsyncadd [#allocation5], 4294950912  ;;  %s3997_s23 = sld [smem:[#allocation8_spill]]  ;;  %vm138_vm0 = vcmask 261120   ;;  %vm276_vm1 = vcmask 523264   ;;  %v400_v26 = vld [vmem:[#allocation2 + $0x8] sm:$0xff] }
  0x22   :  { %s3998_s26 = sld [smem:[#allocation9_spill]]  ;;  %v398_v27 = vld [vmem:[#allocation2] sm:$0xff]  ;;  %vm401_vm2 = vcmask 64512   ;;  %v597_v36 = vld [vmem:[#allocation2 + $0x10] sm:$0xff]  ;;  %v700_v41 = vld [vmem:[#allocation2 + $0x18] sm:$0xff]  ;;  %vm802_vm3 = vcmask 130048  }
  0x23   :  { %s3999_s1 = sld [smem:[#allocation10_spill]]  ;;  %vm3369_vm4 = vmmov 0   ;;  %vm1863_vm5 = vcmask 1043456  }
  0x24   :  { %s4000_s22 = sld [smem:[#allocation12_spill]] }
  0x27   :  { %v3277_v0 = vld [vmem:[%s3997_s23 + $0x8] sm:$0xff]   ;;  %v3278_v1 = vld [vmem:[%s3997_s23] sm:$0xff]  }
  0x28   :  { %3018 = vmatprep.subr.bf16.mxu0 %v3277_v0  ;;  %v3279_v2 = vld [vmem:[%s3998_s26] sm:$0xff]   ;;  %v3280_v3 = vld [vmem:[%s3998_s26 + $0x8] sm:$0xff]   ;;  %v3281_v4 = vld [vmem:[%s3998_s26 + $0x10] sm:$0xff]  }
  0x29   :  { %3019 = vmatpush3.bf16.msra.mxu0 %v3277_v0  ;;  %3022 = vmatprep.mubr.msk.bf16.mxu0 %vm138_vm0, %v3279_v2  ;;  %v3282_v5 = vld [vmem:[%s3998_s26 + $0x18] sm:$0xff]   ;;  %v3283_v6 = vld [vmem:[%s3999_s1] sm:$0xff]   ;;  %v3284_v19 = vld [vmem:[%s3999_s1 + $0x8] sm:$0xff]  }
  0x2a   :  { %3020 = vmatprep.subr.bf16.mxu0 %v3278_v1  ;;  %3038 = vmatprep.mubr.msk.bf16.mxu1 %vm276_vm1, %v3283_v6  ;;  %v3285_v20 = vld [vmem:[%s3999_s1 + $0x10] sm:$0xff]   ;;  %v3286_v21 = vld [vmem:[%s3999_s1 + $0x18] sm:$0xff]   ;;  %v3287_v22 = vld [vmem:[%s3999_s1 + $0x20] sm:$0xff]  }
  0x2b   :  { %v3288_v23 = vld [vmem:[%s3999_s1 + $0x28] sm:$0xff]   ;;  %v3289_v24 = vld [vmem:[%s3999_s1 + $0x30] sm:$0xff]   ;;  %v3290_v25 = vld [vmem:[%s3999_s1 + $0x38] sm:$0xff]  }
  0x2d   :  { %3021 = vmatpush3.bf16.msra.mxu0 %v3278_v1 }
  0x2e   :  { %3054 = vmatprep.subr.mxu0 %v400_v26 }
  0x30   :  { %3023 = vmatmul.mubr.msk.bf16.vlgmr.msra.gmra.mxu0 %vm138_vm0, %v3280_v3 }
  0x31   :  { %3026 = vmatprep.mubr.msk.bf16.mxu0 %vm138_vm0, %v3281_v4  ;;  %3055 = vmatpush3.msra.mxu0 %v400_v26 }
  0x32   :  { %3062 = vmatprep.subr.mxu0 %v398_v27 }
  0x38   :  { %3027 = vmatmul.mubr.msk.bf16.gmra.mxu0 %vm138_vm0, %v3282_v5 }
  0xf0   :  { %v3024_v7 = vpop.f32.mrf.mxu0 }
  0xf2   :  { %v185_v8 = vpop.f32.mrf.mxu0 }
  0xf4   :  { %v3025_v9 = vpop.f32.mrf.mxu0 }
  0xf5   :  { %v233_v17 = vpack.c.bf16 %v3025_v9, %v3024_v7 }
  0xf6   :  { %v188_v10 = vpop.f32.mrf.mxu0 }
  0xf7   :  { %v232_v18 = vpack.c.bf16 %v188_v10, %v185_v8 }
  0xf8   :  { %v3028_v11 = vpop.f32.mrf.mxu0 }
  0xfa   :  { %v201_v12 = vpop.f32.mrf.mxu0 }
  0xfc   :  { %v3029_v13 = vpop.f32.mrf.mxu0 }
  0xfd   :  { %v235_v14 = vpack.c.bf16 %v3029_v13, %v3028_v11 }
  0xfe   :  { %v204_v15 = vpop.f32.mrf.mxu0 }
  0xff   :  { %v234_v16 = vpack.c.bf16 %v204_v15, %v201_v12  ;;  %3030 = vmatprep.subr.bf16.mxu1 %v235_v14 }
 0x100   :  { %3031 = vmatpush3.bf16.msra.mxu1 %v235_v14 }
 0x101   :  { %3032 = vmatprep.subr.bf16.mxu1 %v234_v16 }
 0x104   :  { %3033 = vmatpush3.bf16.msra.mxu1 %v234_v16 }
 0x105   :  { %3034 = vmatprep.subr.bf16.mxu1 %v233_v17 }
 0x108   :  { %3035 = vmatpush3.bf16.msra.mxu1 %v233_v17 }
 0x109   :  { %3036 = vmatprep.subr.bf16.mxu1 %v232_v18 }
 0x10c   :  { %3037 = vmatpush3.bf16.msra.mxu1 %v232_v18 }
 0x10f   :  { %3039 = vmatmul.mubr.msk.bf16.vlgmr.msra.gmra.mxu1 %vm276_vm1, %v3284_v19 }
 0x110   :  { %3042 = vmatprep.mubr.msk.bf16.mxu1 %vm276_vm1, %v3285_v20 }
 0x117   :  { %3043 = vmatmul.mubr.msk.bf16.gmra.mxu1 %vm276_vm1, %v3286_v21 }
 0x118   :  { %3046 = vmatprep.mubr.msk.bf16.mxu1 %vm276_vm1, %v3287_v22  ;;  %v3367_v22 = vmov 0  }
 0x119   :  { %3276 = vset.pattern.permute.xlu1 %v3367_v22  ;;  %3275 = vset.pattern.permute.xlu0 %v3367_v22 }
 0x11f   :  { %3047 = vmatmul.mubr.msk.bf16.gmra.mxu1 %vm276_vm1, %v3288_v23 }
 0x120   :  { %3050 = vmatprep.mubr.msk.bf16.mxu1 %vm276_vm1, %v3289_v24 }
 0x127   :  { %3051 = vmatmul.mubr.msk.bf16.gmra.mxu1 %vm276_vm1, %v3290_v25 }
 0x1cf   :  { %v3040_v28 = vpop.f32.mrf.mxu1 }
 0x1d1   :  { %v335_v29 = vpop.f32.mrf.mxu1 }
 0x1d3   :  { %v3041_v30 = vpop.f32.mrf.mxu1 }
 0x1d5   :  { %v338_v31 = vpop.f32.mrf.mxu1 }
 0x1d7   :  { %v3044_v32 = vpop.f32.mrf.mxu1 }
 0x1d9   :  { %v351_v33 = vpop.f32.mrf.mxu1 }
 0x1da   :  { %3056 = vmatprep.mubr.msk.f32.mxu0 %vm401_vm2, %v351_v33 }
 0x1db   :  { %v3045_v34 = vpop.f32.mrf.mxu1 }
 0x1dd   :  { %v354_v35 = vpop.f32.mrf.mxu1 }
 0x1de   :  { %3057 = vmatmul.mubr.msk.f32.vlgmr.msra.gmra.mxu0 %vm401_vm2, %v354_v35 }
 0x1df   :  { %3059 = vmatprep.mubr.msk.f32.mxu0 %vm401_vm2, %v3044_v32  ;;  %v3048_v37 = vpop.f32.mrf.mxu1  ;;  %3063 = vmatpush3.msra.mxu0 %v398_v27 }
 0x1e0   :  { %3070 = vmatprep.subr.mxu0 %v597_v36 }
 0x1e1   :  { %v367_v38 = vpop.f32.mrf.mxu1 }
 0x1e2   :  { %3060 = vmatmul.mubr.msk.f32.gmra.mxu0 %vm401_vm2, %v3045_v34 }
 0x1e3   :  { %3064 = vmatprep.mubr.msk.f32.mxu0 %vm401_vm2, %v335_v29  ;;  %v3049_v39 = vpop.f32.mrf.mxu1 }
 0x1e5   :  { %v370_v40 = vpop.f32.mrf.mxu1 }
 0x1e6   :  { %3065 = vmatmul.mubr.msk.f32.vlgmr.msra.gmra.mxu0 %vm401_vm2, %v338_v31 }
 0x1e7   :  { %3067 = vmatprep.mubr.msk.f32.mxu0 %vm401_vm2, %v3040_v28  ;;  %3071 = vmatpush3.msra.mxu0 %v597_v36  ;;  %v3052_v42 = vpop.f32.mrf.mxu1 }
 0x1e8   :  { %3078 = vmatprep.subr.mxu0 %v700_v41 }
 0x1e9   :  { %v383_v43 = vpop.f32.mrf.mxu1 }
 0x1ea   :  { %3068 = vmatmul.mubr.msk.f32.gmra.mxu0 %vm401_vm2, %v3041_v30 }
 0x1eb   :  { %3072 = vmatprep.mubr.msk.f32.mxu0 %vm401_vm2, %v367_v38  ;;  %v3053_v44 = vpop.f32.mrf.mxu1 }
 0x1ed   :  { %v386_v45 = vpop.f32.mrf.mxu1 }
 0x1ee   :  { %3073 = vmatmul.mubr.msk.f32.vlgmr.msra.gmra.mxu0 %vm401_vm2, %v370_v40 }
 0x1ef   :  { %3075 = vmatprep.mubr.msk.f32.mxu0 %vm401_vm2, %v3048_v37  ;;  %3079 = vmatpush3.msra.mxu0 %v700_v41 }
 0x1f2   :  { %3076 = vmatmul.mubr.msk.f32.gmra.mxu0 %vm401_vm2, %v3049_v39 }
 0x1f3   :  { %3080 = vmatprep.mubr.msk.f32.mxu0 %vm401_vm2, %v383_v43 }
 0x1f6   :  { %3081 = vmatmul.mubr.msk.f32.vlgmr.msra.gmra.mxu0 %vm401_vm2, %v386_v45 }
 0x1f7   :  { %3083 = vmatprep.mubr.msk.f32.mxu0 %vm401_vm2, %v3052_v42 }
 0x1fa   :  { %3084 = vmatmul.mubr.msk.f32.gmra.mxu0 %vm401_vm2, %v3053_v44 }
 0x29e   :  { %v3058_v46 = vpop.f32.mrf.mxu0 }
 0x2a0   :  { %v480_v47 = vpop.f32.mrf.mxu0 }
 0x2a2   :  { %v3061_v48 = vpop.f32.mrf.mxu0 }
 0x2a4   :  { %v490_v49 = vpop.f32.mrf.mxu0 }
 0x2a6   :  { %v3066_v50 = vpop.f32.mrf.mxu0 }
 0x2a7   :  { %v583_v57 = vadd.f32 %v3066_v50, %v3058_v46 }
 0x2a8   :  { %v577_v51 = vpop.f32.mrf.mxu0 }
 0x2a9   :  { %v578_v7 = vadd.f32 %v577_v51, %v480_v47  ;;  %v858_v51 = vld [vmem:[%s3978_s12 + $0x18] sm:$0xff] }
 0x2aa   :  { %v3069_v52 = vpop.f32.mrf.mxu0 }
 0x2ab   :  { %v593_v61 = vadd.f32 %v3069_v52, %v3061_v48 }
 0x2ac   :  { %v587_v53 = vpop.f32.mrf.mxu0 }
 0x2ad   :  { %v588_v0 = vadd.f32 %v587_v53, %v490_v49 }
 0x2ae   :  { %v3074_v54 = vpop.f32.mrf.mxu0 }
 0x2af   :  { %v696_v59 = vadd.f32 %v3074_v54, %v583_v57  ;;  %v857_v54 = vld [vmem:[%s3978_s12 + $0x10] sm:$0xff] }
 0x2b0   :  { %v676_v55 = vpop.f32.mrf.mxu0 }
 0x2b1   :  { %v695_v11 = vadd.f32 %v676_v55, %v578_v7 }
 0x2b2   :  { %v3077_v56 = vpop.f32.mrf.mxu0 }
 0x2b3   :  { %v698_v1 = vadd.f32 %v3077_v56, %v593_v61  ;;  %v893_v56 = vld [vmem:[%s3979_s13 + $0x10] sm:$0xff] }
 0x2b4   :  { %v686_v58 = vpop.f32.mrf.mxu0 }
 0x2b5   :  { %v697_v4 = vadd.f32 %v686_v58, %v588_v0  ;;  %v894_v58 = vld [vmem:[%s3979_s13 + $0x18] sm:$0xff]  ;;  %v856_v0 = vld [vmem:[%s3978_s12 + $0x8] sm:$0xff] }
 0x2b6   :  { %v3082_v60 = vpop.f32.mrf.mxu0 }
 0x2b7   :  { %v3551_v62 = vadd.f32 %v3082_v60, %v696_v59  ;;  %v855_v60 = vld [vmem:[%s3978_s12] sm:$0xff] }
 0x2b8   :  { %v779_v63 = vpop.f32.mrf.mxu0 }
 0x2b9   :  { %v806_v2 = vsel %vm802_vm3, %v3551_v62, 0.0  ;;  %v3566_v14 = vadd.f32 %v779_v63, %v695_v11  ;;  %v820_v17 = vmul.f32 %v3551_v62, %v3551_v62 }
 0x2ba   :  { %807 = vadd.xlane.f32.xlu1 %v806_v2  ;;  %v3085_v3 = vpop.f32.mrf.mxu0  ;;  %v891_v2 = vld [vmem:[%s3979_s13] sm:$0xff] }
 0x2bb   :  { %v3555_v5 = vadd.f32 %v3085_v3, %v698_v1  ;;  %v803_v18 = vsel %vm802_vm3, %v3566_v14, 0.0  ;;  %v819_v19 = vmul.f32 %v3566_v14, %v3566_v14  ;;  %v826_v20 = vsel %vm802_vm3, %v820_v17, 0.0  ;;  %v892_v3 = vld [vmem:[%s3979_s13 + $0x8] sm:$0xff] }
 0x2bc   :  { %v789_v6 = vpop.f32.mrf.mxu0 }
 0x2bd   :  { %v3557_v8 = vadd.f32 %v789_v6, %v697_v4  ;;  %v812_v9 = vsel %vm802_vm3, %v3555_v5, 0.0  ;;  %v822_v10 = vmul.f32 %v3555_v5, %v3555_v5  ;;  %v823_v21 = vsel %vm802_vm3, %v819_v19, 0.0  ;;  %v3291_v4 = vld [vmem:[%s4000_s22] sm:$0xff]  }
 0x2be   :  { %813 = vadd.xlane.f32.xlu0 %v812_v9  ;;  %3090 = vmatprep.mubr.msk.bf16.mxu1 %vm138_vm0, %v3291_v4 }
 0x2bf   :  { %v832_v12 = vsel %vm802_vm3, %v822_v10, 0.0  ;;  %v821_v13 = vmul.f32 %v3557_v8, %v3557_v8  ;;  %v809_v15 = vsel %vm802_vm3, %v3557_v8, 0.0 }
 0x2c0   :  { %833 = vadd.xlane.f32.xlu1 %v832_v12 }
 0x2c1   :  { %v829_v16 = vsel %vm802_vm3, %v821_v13, 0.0 }
 0x2c2   :  { %810 = vadd.xlane.f32.xlu0 %v809_v15 }
 0x2c4   :  { %830 = vadd.xlane.f32.xlu1 %v829_v16 }
 0x2c6   :  { %804 = vadd.xlane.f32.xlu0 %v803_v18 }
 0x2c8   :  { %827 = vadd.xlane.f32.xlu1 %v826_v20 }
 0x2ca   :  { %824 = vadd.xlane.f32.xlu0 %v823_v21 }
 0x343   :  { %v808_v23 = vpop.xlane.xlu1 %807 }
 0x344   :  { %v3583_v37 = vmul.f32 0.0625, %v808_v23 }
 0x346   :  { %v840_v44 = vmul.f32 %v3583_v37, %v3583_v37 }
 0x347   :  { %v814_v24 = vpop.xlane.xlu0 %813 }
 0x348   :  { %v3579_v25 = vmul.f32 0.0625, %v814_v24 }
 0x349   :  { %v834_v26 = vpop.xlane.xlu1 %833 }
 0x34a   :  { %v842_v27 = vmul.f32 %v3579_v25, %v3579_v25  ;;  %v838_v28 = vmul.f32 0.0625, %v834_v26  ;;  %v866_v11 = vsub.f32 %v3555_v5, %v3579_v25  ;;  %v864_v26 = vsub.f32 %v3551_v62, %v3583_v37  ;;  %v3294_v62 = vld [vmem:[%s4000_s22 + $0x18] sm:$0xff]   ;;  %v2833_v37 = vld [vmem:[%s3971_s5 + $0x30] sm:$0xff] }
 0x34b   :  { %v811_v29 = vpop.xlane.xlu0 %810 }
 0x34c   :  { %v846_v30 = vsub.f32 %v838_v28, %v842_v27  ;;  %v817_v31 = vmul.f32 0.0625, %v811_v29 }
 0x34d   :  { %v831_v32 = vpop.xlane.xlu1 %830 }
 0x34e   :  { %v850_v33 = vadd.f32 1e-05, %v846_v30  ;;  %v841_v34 = vmul.f32 %v817_v31, %v817_v31  ;;  %v837_v35 = vmul.f32 0.0625, %v831_v32  ;;  %v865_v7 = vsub.f32 %v3557_v8, %v817_v31  ;;  %v3292_v32 = vld [vmem:[%s4000_s22 + $0x8] sm:$0xff]  }
 0x34f   :  { %v805_v36 = vpop.xlane.xlu0 %804 }
 0x350   :  { %3301 = vrsqrt.f32 %v850_v33  ;;  %v845_v38 = vsub.f32 %v837_v35, %v841_v34  ;;  %v815_v39 = vmul.f32 0.0625, %v805_v36  ;;  %v2824_v33 = vld [vmem:[%s3971_s5 + $0x18] sm:$0xff]  ;;  %v2823_v34 = vld [vmem:[%s3971_s5 + $0x10] sm:$0xff]  ;;  %v1031_v35 = vld [vmem:[%s3971_s5 + $0x8] sm:$0xff] }
 0x351   :  { %v828_v40 = vpop.xlane.xlu1 %827  ;;  %3098 = vmatprep.subr.mxu0 %v2824_v33  ;;  %v2834_v36 = vld [vmem:[%s3971_s5 + $0x38] sm:$0xff] }
 0x352   :  { %v849_v41 = vadd.f32 1e-05, %v845_v38  ;;  %v836_v42 = vmul.f32 0.0625, %v828_v40  ;;  %v839_v45 = vmul.f32 %v815_v39, %v815_v39  ;;  %v863_v23 = vsub.f32 %v3566_v14, %v815_v39  ;;  %v3293_v14 = vld [vmem:[%s4000_s22 + $0x10] sm:$0xff]   ;;  %3099 = vmatpush3.msra.mxu0 %v2824_v33 }
 0x353   :  { %v825_v43 = vpop.xlane.xlu0 %824  ;;  %3100 = vmatprep.subr.mxu0 %v2823_v34 }
 0x354   :  { %3303 = vrsqrt.f32 %v849_v41  ;;  %v835_v46 = vmul.f32 0.0625, %v825_v43  ;;  %v844_v47 = vsub.f32 %v836_v42, %v840_v44  ;;  %3101 = vmatpush3.msra.mxu0 %v2823_v34  ;;  %v1030_v41 = vld [vmem:[%s3971_s5] sm:$0xff]  ;;  %v2830_v43 = vld [vmem:[%s3971_s5 + $0x28] sm:$0xff] }
 0x355   :  { %3105 = vmatprep.subr.mxu0 %v1031_v35 }
 0x356   :  { %v843_v48 = vsub.f32 %v835_v46, %v839_v45  ;;  %v848_v50 = vadd.f32 1e-05, %v844_v47  ;;  %v2829_v45 = vld [vmem:[%s3971_s5 + $0x20] sm:$0xff] }
 0x358   :  { %v847_v49 = vadd.f32 1e-05, %v843_v48 }
 0x35a   :  { %3305 = vrsqrt.f32 %v847_v49 }
 0x35b   :  { %3307 = vrsqrt.f32 %v848_v50 }
 0x35d   :  { %v3302_v52 = vpop.eup %3301 }
 0x35e   :  { %v862_v53 = vmul.f32 %v3302_v52, %v858_v51 }
 0x360   :  { %884 = vperm.xlu1 %3276, %v862_v53  }
 0x361   :  { %v3304_v55 = vpop.eup %3303 }
 0x362   :  { %v861_v57 = vmul.f32 %v3304_v55, %v857_v54 }
 0x364   :  { %907 = vperm.xlu1 %3276, %v893_v56   ;;  %879 = vperm.xlu0 %3275, %v861_v57  }
 0x367   :  { %v3306_v59 = vpop.eup %3305 }
 0x368   :  { %912 = vperm.xlu1 %3276, %v894_v58   ;;  %v859_v61 = vmul.f32 %v3306_v59, %v855_v60  ;;  %v3308_v63 = vpop.eup %3307 }
 0x369   :  { %v860_v1 = vmul.f32 %v3308_v63, %v856_v0 }
 0x36c   :  { %869 = vperm.xlu1 %3276, %v859_v61  }
 0x370   :  { %874 = vperm.xlu1 %3276, %v860_v1  }
 0x374   :  { %897 = vperm.xlu1 %3276, %v891_v2  }
 0x378   :  { %902 = vperm.xlu1 %3276, %v892_v3  }
 0x3db   :  { %v885_v6 = vpop.permute.xlu1 %884 }
 0x3dc   :  { %v890_v13 = vmul.f32 %v885_v6, %v866_v11 }
 0x3df   :  { %v908_v9 = vpop.permute.xlu1 %907  ;;  %v880_v10 = vpop.permute.xlu0 %879 }
 0x3e0   :  { %v889_v12 = vmul.f32 %v880_v10, %v865_v7 }
 0x3e2   :  { %v917_v15 = vadd.f32 %v908_v9, %v889_v12 }
 0x3e3   :  { %v913_v16 = vpop.permute.xlu1 %912 }
 0x3e4   :  { %v918_v17 = vadd.f32 %v913_v16, %v890_v13  ;;  %v921_v18 = vmax.f32 %v917_v15, 0.0 }
 0x3e6   :  { %v922_v19 = vmax.f32 %v918_v17, 0.0 }
 0x3e7   :  { %v870_v20 = vpop.permute.xlu1 %869 }
 0x3e8   :  { %v932_v21 = vpack.c.bf16 %v922_v19, %v921_v18  ;;  %v887_v24 = vmul.f32 %v870_v20, %v863_v23  ;;  %v1395_v23 = vld [vmem:[%s3980_s14] sm:$0xff] }
 0x3ea   :  { %3086 = vmatprep.subr.bf16.mxu1 %v932_v21 }
 0x3eb   :  { %v875_v22 = vpop.permute.xlu1 %874  ;;  %3087 = vmatpush3.bf16.msra.mxu1 %v932_v21 }
 0x3ec   :  { %v888_v5 = vmul.f32 %v875_v22, %v864_v26 }
 0x3ef   :  { %v898_v8 = vpop.permute.xlu1 %897 }
 0x3f0   :  { %v915_v25 = vadd.f32 %v898_v8, %v887_v24  ;;  %v1396_v24 = vld [vmem:[%s3980_s14 + $0x8] sm:$0xff] }
 0x3f2   :  { %v919_v29 = vmax.f32 %v915_v25, 0.0 }
 0x3f3   :  { %v903_v27 = vpop.permute.xlu1 %902 }
 0x3f4   :  { %v916_v28 = vadd.f32 %v903_v27, %v888_v5  ;;  %v1414_v27 = vld [vmem:[%s3981_s15 + $0x8] sm:$0xff] }
 0x3f6   :  { %v920_v30 = vmax.f32 %v916_v28, 0.0  ;;  %v1413_v28 = vld [vmem:[%s3981_s15] sm:$0xff] }
 0x3f8   :  { %v931_v31 = vpack.c.bf16 %v920_v30, %v919_v29  ;;  %v3295_v29 = vld [vmem:[%s3972_s6] sm:$0xff]   ;;  %v3368_v30 = vmov 0.0  }
 0x3fa   :  { %3088 = vmatprep.subr.bf16.mxu1 %v931_v31 }
 0x3fb   :  { %3089 = vmatpush3.bf16.msra.mxu1 %v931_v31  ;;  %v2844_v31 = vld [vmem:[%s3973_s7 + $0x38] sm:$0xff] }
 0x3fc   :  { %3119 = vmatprep.subr.mxu1 %v2834_v36 }
 0x3fe   :  { %3091 = vmatmul.mubr.msk.bf16.vlgmr.msra.gmra.mxu1 %vm138_vm0, %v3292_v32 }
 0x3ff   :  { %3094 = vmatprep.mubr.msk.bf16.mxu1 %vm138_vm0, %v3293_v14  ;;  %3120 = vmatpush3.msra.mxu1 %v2834_v36 }
 0x400   :  { %3121 = vmatprep.subr.mxu1 %v2833_v37 }
 0x401   :  { %3122 = vmatpush3.msra.mxu1 %v2833_v37 }
 0x402   :  { %3132 = vmatprep.subr.mxu1 %v3368_v30 }
 0x406   :  { %3095 = vmatmul.mubr.msk.bf16.gmra.mxu1 %vm138_vm0, %v3294_v62 }
 0x4be   :  { %v3092_v38 = vpop.f32.mrf.mxu1 }
 0x4bf   :  { %3102 = vmatprep.mubr.msk.f32.mxu0 %vm802_vm3, %v3092_v38 }
 0x4c0   :  { %v999_v39 = vpop.f32.mrf.mxu1 }
 0x4c2   :  { %v3093_v40 = vpop.f32.mrf.mxu1 }
 0x4c3   :  { %3103 = vmatmul.mubr.msk.f32.vlgmr.msra.gmra.mxu0 %vm802_vm3, %v3093_v40 }
 0x4c4   :  { %v1002_v42 = vpop.f32.mrf.mxu1  ;;  %3106 = vmatpush3.msra.mxu0 %v1031_v35  ;;  %3109 = vmatprep.mubr.msk.f32.mxu0 %vm802_vm3, %v999_v39 }
 0x4c5   :  { %3107 = vmatprep.subr.mxu0 %v1030_v41 }
 0x4c6   :  { %v3096_v44 = vpop.f32.mrf.mxu1  ;;  %3108 = vmatpush3.msra.mxu0 %v1030_v41 }
 0x4c7   :  { %3110 = vmatmul.mubr.msk.f32.vlgmr.msra.gmra.mxu0 %vm802_vm3, %v1002_v42  ;;  %3112 = vmatprep.subr.mxu0 %v2830_v43 }
 0x4c8   :  { %v1015_v46 = vpop.f32.mrf.mxu1  ;;  %3113 = vmatpush3.msra.mxu0 %v2830_v43  ;;  %3123 = vmatprep.mubr.msk.f32.mxu1 %vm802_vm3, %v3096_v44  ;;  %v3296_v43 = vld [vmem:[%s3972_s6 + $0x8] sm:$0xff]   ;;  %v1502_v44 = vld [vmem:[%s3973_s7 + $0x18] sm:$0xff] }
 0x4c9   :  { %3114 = vmatprep.subr.mxu0 %v2829_v45  ;;  %3116 = vmatprep.mubr.msk.f32.mxu0 %vm802_vm3, %v1015_v46  ;;  %v1500_v46 = vld [vmem:[%s3973_s7 + $0x8] sm:$0xff] }
 0x4ca   :  { %v3097_v47 = vpop.f32.mrf.mxu1  ;;  %3115 = vmatpush3.msra.mxu0 %v2829_v45  ;;  %v1501_v45 = vld [vmem:[%s3973_s7 + $0x10] sm:$0xff] }
 0x4cb   :  { %3124 = vmatmul.mubr.msk.f32.vlgmr.msra.gmra.mxu1 %vm802_vm3, %v3097_v47  ;;  %v2843_v47 = vld [vmem:[%s3973_s7 + $0x30] sm:$0xff] }
 0x4cc   :  { %v1018_v48 = vpop.f32.mrf.mxu1  ;;  %3133 = vmatpush3.msra.mxu1 %v2844_v31  ;;  %3140 = vmatprep.mubr.msk.f32.mxu1 %vm3369_vm4, %v3368_v30  ;;  %v2865_v31 = vld [vmem:[%s3975_s9 + $0x60] sm:$0xff] }
 0x4cd   :  { %3117 = vmatmul.mubr.msk.f32.vlgmr.msra.gmra.mxu0 %vm802_vm3, %v1018_v48  ;;  %3134 = vmatprep.subr.mxu1 %v3368_v30  ;;  %v1499_v48 = vld [vmem:[%s3973_s7] sm:$0xff] }
 0x4ce   :  { %3128 = vmatprep.mubr.msk.bf16.mxu0 %vm802_vm3, %v3295_v29  ;;  %3135 = vmatpush3.msra.mxu1 %v2843_v47  ;;  %v2866_v29 = vld [vmem:[%s3975_s9 + $0x68] sm:$0xff]  ;;  %v2863_v47 = vld [vmem:[%s3975_s9 + $0x50] sm:$0xff] }
 0x4cf   :  { %3136 = vmatprep.subr.mxu1 %v3368_v30 }
 0x583   :  { %v3104_v49 = vpop.f32.mrf.mxu0 }
 0x585   :  { %v1107_v50 = vpop.f32.mrf.mxu0 }
 0x587   :  { %v3111_v51 = vpop.f32.mrf.mxu0 }
 0x588   :  { %v1194_v53 = vadd.f32 %v3111_v51, %v3104_v49  ;;  %v2842_v49 = vld [vmem:[%s3973_s7 + $0x28] sm:$0xff] }
 0x589   :  { %v1188_v52 = vpop.f32.mrf.mxu0  ;;  %3137 = vmatpush3.msra.mxu1 %v2842_v49  ;;  %v2862_v49 = vld [vmem:[%s3975_s9 + $0x48] sm:$0xff] }
 0x58a   :  { %v1189_v56 = vadd.f32 %v1188_v52, %v1107_v50  ;;  %3138 = vmatprep.subr.mxu1 %v3368_v30  ;;  %v2841_v50 = vld [vmem:[%s3973_s7 + $0x20] sm:$0xff]  ;;  %v2855_v52 = vld [vmem:[%s3973_s7 + $0x78] sm:$0xff] }
 0x58b   :  { %v3125_v55 = vpop.f32.mrf.mxu1  ;;  %3139 = vmatpush3.msra.mxu1 %v2841_v50  ;;  %v2861_v50 = vld [vmem:[%s3975_s9 + $0x40] sm:$0xff] }
 0x58c   :  { %3154 = vmatprep.subr.mxu1 %v3368_v30 }
 0x58d   :  { %v3118_v54 = vpop.f32.mrf.mxu0  ;;  %v1358_v61 = vpop.f32.mrf.mxu1 }
 0x58e   :  { %v1282_v57 = vadd.f32 %v3118_v54, %v1194_v53  ;;  %v2854_v54 = vld [vmem:[%s3973_s7 + $0x70] sm:$0xff] }
 0x58f   :  { %v1272_v58 = vpop.f32.mrf.mxu0 }
 0x590   :  { %v1281_v59 = vadd.f32 %v1272_v58, %v1189_v56  ;;  %v1368_v60 = vadd.f32 %v3125_v55, %v1282_v57  ;;  %v2850_v56 = vld [vmem:[%s3973_s7 + $0x58] sm:$0xff]  ;;  %v2853_v57 = vld [vmem:[%s3973_s7 + $0x68] sm:$0xff] }
 0x592   :  { %v1367_v63 = vadd.f32 %v1358_v61, %v1281_v59  ;;  %v1372_v0 = vsel %vm138_vm0, %v1368_v60, 0.0  ;;  %v1378_v3 = vmul.f32 %v1368_v60, %v1368_v60  ;;  %v2849_v59 = vld [vmem:[%s3973_s7 + $0x50] sm:$0xff]  ;;  %v2848_v61 = vld [vmem:[%s3973_s7 + $0x48] sm:$0xff] }
 0x593   :  { %1373 = vadd.xlane.f32.xlu0 %v1372_v0 }
 0x594   :  { %v1369_v1 = vsel %vm138_vm0, %v1367_v63, 0.0  ;;  %v1377_v2 = vmul.f32 %v1367_v63, %v1367_v63  ;;  %v1382_v6 = vsel %vm138_vm0, %v1378_v3, 0.0 }
 0x595   :  { %1370 = vadd.xlane.f32.xlu1 %v1369_v1 }
 0x596   :  { %v1379_v4 = vsel %vm138_vm0, %v1377_v2, 0.0 }
 0x597   :  { %1380 = vadd.xlane.f32.xlu0 %v1379_v4 }
 0x599   :  { %1383 = vadd.xlane.f32.xlu1 %v1382_v6 }
 0x61c   :  { %v1374_v7 = vpop.xlane.xlu0 %1373 }
 0x61d   :  { %v1376_v10 = vmul.f32 0.03125, %v1374_v7 }
 0x61e   :  { %v1371_v9 = vpop.xlane.xlu1 %1370 }
 0x61f   :  { %v1375_v11 = vmul.f32 0.03125, %v1371_v9  ;;  %v1388_v17 = vmul.f32 %v1376_v10, %v1376_v10  ;;  %v1400_v14 = vsub.f32 %v1368_v60, %v1376_v10  ;;  %v2852_v60 = vld [vmem:[%s3973_s7 + $0x60] sm:$0xff] }
 0x620   :  { %v1381_v12 = vpop.xlane.xlu0 %1380 }
 0x621   :  { %v1387_v13 = vmul.f32 %v1375_v11, %v1375_v11  ;;  %v1385_v15 = vmul.f32 0.03125, %v1381_v12  ;;  %v1399_v33 = vsub.f32 %v1367_v63, %v1375_v11  ;;  %v2847_v63 = vld [vmem:[%s3973_s7 + $0x40] sm:$0xff] }
 0x622   :  { %v1384_v16 = vpop.xlane.xlu1 %1383 }
 0x623   :  { %v1389_v18 = vsub.f32 %v1385_v15, %v1387_v13  ;;  %v1386_v19 = vmul.f32 0.03125, %v1384_v16 }
 0x625   :  { %v1391_v20 = vadd.f32 1e-05, %v1389_v18  ;;  %v1390_v21 = vsub.f32 %v1386_v19, %v1388_v17  ;;  %v1834_v17 = vld [vmem:[%s3983_s17] sm:$0xff] }
 0x627   :  { %3309 = vrsqrt.f32 %v1391_v20  ;;  %v1392_v22 = vadd.f32 1e-05, %v1390_v21 }
 0x629   :  { %3311 = vrsqrt.f32 %v1392_v22 }
 0x634   :  { %v3310_v8 = vpop.eup %3309 }
 0x635   :  { %v1397_v26 = vmul.f32 %v3310_v8, %v1395_v23 }
 0x636   :  { %v3312_v5 = vpop.eup %3311 }
 0x637   :  { %1403 = vperm.xlu0 %3275, %v1397_v26   ;;  %v1398_v25 = vmul.f32 %v3312_v5, %v1396_v24  ;;  %v1825_v24 = vld [vmem:[%s3982_s16] sm:$0xff] }
 0x639   :  { %1408 = vperm.xlu1 %3276, %v1398_v25   ;;  %v3297_v25 = vld [vmem:[%s3974_s8] sm:$0xff]  }
 0x63b   :  { %1422 = vperm.xlu0 %3275, %v1414_v27   ;;  %v2868_v27 = vld [vmem:[%s3975_s9 + $0x78] sm:$0xff] }
 0x63d   :  { %1417 = vperm.xlu1 %3276, %v1413_v28   ;;  %v2867_v28 = vld [vmem:[%s3975_s9 + $0x70] sm:$0xff] }
 0x6b2   :  { %v1404_v32 = vpop.permute.xlu0 %1403 }
 0x6b3   :  { %v1411_v36 = vmul.f32 %v1404_v32, %v1399_v33  ;;  %v2864_v32 = vld [vmem:[%s3975_s9 + $0x58] sm:$0xff] }
 0x6b4   :  { %v1409_v62 = vpop.permute.xlu1 %1408 }
 0x6b5   :  { %v1412_v34 = vmul.f32 %v1409_v62, %v1400_v14 }
 0x6b6   :  { %v1423_v35 = vpop.permute.xlu0 %1422 }
 0x6b7   :  { %v1426_v37 = vadd.f32 %v1423_v35, %v1412_v34 }
 0x6b8   :  { %v1418_v38 = vpop.permute.xlu1 %1417 }
 0x6b9   :  { %v1425_v39 = vadd.f32 %v1418_v38, %v1411_v36  ;;  %v1428_v40 = vmax.f32 %v1426_v37, 0.0 }
 0x6bb   :  { %v1427_v41 = vmax.f32 %v1425_v39, 0.0  ;;  %v3298_v39 = vld [vmem:[%s3974_s8 + $0x8] sm:$0xff]  }
 0x6bd   :  { %v1433_v42 = vpack.c.bf16 %v1428_v40, %v1427_v41  ;;  %v1923_v40 = vld [vmem:[%s3975_s9 + $0x38] sm:$0xff]  ;;  %v1922_v41 = vld [vmem:[%s3975_s9 + $0x30] sm:$0xff] }
 0x6bf   :  { %3126 = vmatprep.subr.bf16.mxu0 %v1433_v42 }
 0x6c0   :  { %3127 = vmatpush3.bf16.msra.mxu0 %v1433_v42  ;;  %v1921_v42 = vld [vmem:[%s3975_s9 + $0x28] sm:$0xff] }
 0x6c1   :  { %3143 = vmatprep.subr.mxu0 %v3368_v30 }
 0x6c3   :  { %3129 = vmatmul.mubr.msk.bf16.vlgmr.msra.gmra.mxu0 %vm802_vm3, %v3296_v43  ;;  %v1920_v43 = vld [vmem:[%s3975_s9 + $0x20] sm:$0xff] }
 0x6c4   :  { %3144 = vmatpush3.msra.mxu0 %v1502_v44  ;;  %3151 = vmatprep.mubr.msk.f32.mxu0 %vm3369_vm4, %v3368_v30  ;;  %v1919_v44 = vld [vmem:[%s3975_s9 + $0x18] sm:$0xff] }
 0x6c5   :  { %3145 = vmatprep.subr.mxu0 %v3368_v30 }
 0x6c6   :  { %3146 = vmatpush3.msra.mxu0 %v1501_v45  ;;  %v1918_v45 = vld [vmem:[%s3975_s9 + $0x10] sm:$0xff] }
 0x6c7   :  { %3147 = vmatprep.subr.mxu0 %v3368_v30 }
 0x6c8   :  { %3148 = vmatpush3.msra.mxu0 %v1500_v46  ;;  %v1917_v46 = vld [vmem:[%s3975_s9 + $0x8] sm:$0xff] }
 0x6c9   :  { %3149 = vmatprep.subr.mxu0 %v3368_v30 }
 0x6ca   :  { %3150 = vmatpush3.msra.mxu0 %v1499_v48  ;;  %v1916_v48 = vld [vmem:[%s3975_s9] sm:$0xff] }
 0x6cb   :  { %3165 = vmatprep.subr.mxu0 %v3368_v30 }
 0x783   :  { %v3130_v51 = vpop.f32.mrf.mxu0 }
 0x785   :  { %v1484_v53 = vpop.f32.mrf.mxu0 }
 0x786   :  { %3152 = vmatmul.mubr.msk.f32.vlgmr.msra.gmra.mxu0 %vm138_vm0, %v1484_v53 }
 0x787   :  { %v3131_v55 = vpop.f32.mrf.mxu0  ;;  %3166 = vmatpush3.msra.mxu0 %v2855_v52  ;;  %3173 = vmatprep.mubr.msk.f32.mxu0 %vm3369_vm4, %v3368_v30  ;;  %v2887_v52 = vld [vmem:[%s3975_s9 + $0xf8] sm:$0xff] }
 0x788   :  { %3167 = vmatprep.subr.mxu0 %v3368_v30 }
 0x789   :  { %v1487_v58 = vpop.f32.mrf.mxu0  ;;  %3168 = vmatpush3.msra.mxu0 %v2854_v54  ;;  %v2886_v54 = vld [vmem:[%s3975_s9 + $0xf0] sm:$0xff] }
 0x78a   :  { %3141 = vmatmul.mubr.msk.f32.vlgmr.msra.gmra.mxu1 %vm138_vm0, %v1487_v58  ;;  %3169 = vmatprep.subr.mxu0 %v3368_v30 }
 0x78b   :  { %3155 = vmatpush3.msra.mxu1 %v2850_v56  ;;  %3170 = vmatpush3.msra.mxu0 %v2853_v57  ;;  %v2878_v56 = vld [vmem:[%s3975_s9 + $0xb8] sm:$0xff]  ;;  %v2885_v57 = vld [vmem:[%s3975_s9 + $0xe8] sm:$0xff] }
 0x78c   :  { %3156 = vmatprep.subr.mxu1 %v3368_v30  ;;  %3171 = vmatprep.subr.mxu0 %v3368_v30 }
 0x78d   :  { %3157 = vmatpush3.msra.mxu1 %v2849_v59  ;;  %3172 = vmatpush3.msra.mxu0 %v2852_v60  ;;  %v2877_v59 = vld [vmem:[%s3975_s9 + $0xb0] sm:$0xff]  ;;  %v2884_v60 = vld [vmem:[%s3975_s9 + $0xe0] sm:$0xff] }
 0x78e   :  { %3158 = vmatprep.subr.mxu1 %v3368_v30  ;;  %3174 = vmatmul.mubr.msk.f32.vlgmr.msra.gmra.mxu0 %vm138_vm0, %v3131_v55 }
 0x78f   :  { %3159 = vmatpush3.msra.mxu1 %v2848_v61  ;;  %3162 = vmatprep.mubr.msk.f32.mxu1 %vm3369_vm4, %v3368_v30  ;;  %v2876_v61 = vld [vmem:[%s3975_s9 + $0xa8] sm:$0xff] }
 0x790   :  { %3160 = vmatprep.subr.mxu1 %v3368_v30  ;;  %3182 = vmatprep.subr.mxu0 %v3368_v30 }
 0x791   :  { %3161 = vmatpush3.msra.mxu1 %v2847_v63  ;;  %3198 = vmatprep.mubr.msk.f32.mxu0 %vm3369_vm4, %v3368_v30  ;;  %v2883_v63 = vld [vmem:[%s3975_s9 + $0xd8] sm:$0xff] }
 0x792   :  { %3163 = vmatmul.mubr.msk.f32.vlgmr.msra.gmra.mxu1 %vm138_vm0, %v3130_v51  ;;  %3183 = vmatpush3.msra.mxu0 %v2868_v27 }
 0x793   :  { %3178 = vmatprep.mubr.msk.bf16.mxu1 %vm401_vm2, %v3297_v25  ;;  %3184 = vmatprep.subr.mxu0 %v3368_v30 }
 0x794   :  { %3185 = vmatpush3.msra.mxu0 %v2867_v28 }
 0x795   :  { %3186 = vmatprep.subr.mxu0 %v3368_v30 }
 0x796   :  { %3187 = vmatpush3.msra.mxu0 %v2866_v29  ;;  %v2256_v29 = vld [vmem:[%s3984_s18] sm:$0xff] }
 0x797   :  { %3188 = vmatprep.subr.mxu0 %v3368_v30 }
 0x798   :  { %3189 = vmatpush3.msra.mxu0 %v2865_v31 }
 0x799   :  { %3190 = vmatprep.subr.mxu0 %v3368_v30 }
 0x79a   :  { %3191 = vmatpush3.msra.mxu0 %v2864_v32 }
 0x79b   :  { %3192 = vmatprep.subr.mxu0 %v3368_v30 }
 0x79c   :  { %3193 = vmatpush3.msra.mxu0 %v2863_v47  ;;  %v2395_v47 = vld [vmem:[#allocation4 + $0x180] sm:$0xff] }
 0x79d   :  { %3194 = vmatprep.subr.mxu0 %v3368_v30 }
 0x79e   :  { %3195 = vmatpush3.msra.mxu0 %v2862_v49  ;;  %v2393_v49 = vld [vmem:[#allocation4 + $0x170] sm:$0xff] }
 0x79f   :  { %3196 = vmatprep.subr.mxu0 %v3368_v30 }
 0x7a0   :  { %3197 = vmatpush3.msra.mxu0 %v2861_v50  ;;  %v2392_v50 = vld [vmem:[#allocation4 + $0x168] sm:$0xff] }
 0x7a1   :  { %3220 = vmatprep.subr.mxu0 %v3368_v30 }
 0x846   :  { %v1650_v0 = vpop.f32.mrf.mxu0 }
 0x848   :  { %v3153_v1 = vpop.f32.mrf.mxu0 }
 0x849   :  { %v2882_v1 = vld [vmem:[%s3975_s9 + $0xd0] sm:$0xff] }
 0x84a   :  { %v1577_v2 = vpop.f32.mrf.mxu1 }
 0x84b   :  { %v1651_v7 = vadd.f32 %v1650_v0, %v1577_v2  ;;  %v2875_v0 = vld [vmem:[%s3975_s9 + $0xa0] sm:$0xff]  ;;  %v2874_v2 = vld [vmem:[%s3975_s9 + $0x98] sm:$0xff] }
 0x84c   :  { %v3142_v3 = vpop.f32.mrf.mxu1 }
 0x84d   :  { %v2881_v3 = vld [vmem:[%s3975_s9 + $0xc8] sm:$0xff] }
 0x84e   :  { %v1807_v4 = vpop.f32.mrf.mxu0 }
 0x850   :  { %v3175_v6 = vpop.f32.mrf.mxu0 }
 0x851   :  { %v2880_v6 = vld [vmem:[%s3975_s9 + $0xc0] sm:$0xff] }
 0x852   :  { %v1728_v9 = vpop.f32.mrf.mxu1 }
 0x853   :  { %v1732_v10 = vadd.f32 %v1728_v9, %v1651_v7  ;;  %v2872_v7 = vld [vmem:[%s3975_s9 + $0x88] sm:$0xff]  ;;  %v2871_v9 = vld [vmem:[%s3975_s9 + $0x80] sm:$0xff] }
 0x854   :  { %v3164_v11 = vpop.f32.mrf.mxu1 }
 0x855   :  { %v1811_v12 = vadd.f32 %v1807_v4, %v1732_v10  ;;  %v2873_v4 = vld [vmem:[%s3975_s9 + $0x90] sm:$0xff] }
 0x857   :  { %v1812_v13 = vsel %vm276_vm1, %v1811_v12, 0.0  ;;  %v1816_v15 = vmul.f32 %v1811_v12, %v1811_v12 }
 0x858   :  { %1813 = vadd.xlane.f32.xlu1 %v1812_v13 }
 0x859   :  { %v1817_v16 = vsel %vm276_vm1, %v1816_v15, 0.0 }
 0x85a   :  { %1818 = vadd.xlane.f32.xlu0 %v1817_v16 }
 0x869   :  { %1837 = vperm.xlu1 %3276, %v1834_v17  }
 0x8e1   :  { %v1814_v18 = vpop.xlane.xlu1 %1813 }
 0x8e2   :  { %v1815_v19 = vmul.f32 0.015625, %v1814_v18 }
 0x8e3   :  { %v1819_v20 = vpop.xlane.xlu0 %1818 }
 0x8e4   :  { %v1821_v21 = vmul.f32 %v1815_v19, %v1815_v19  ;;  %v1820_v22 = vmul.f32 0.015625, %v1819_v20  ;;  %v1827_v14 = vsub.f32 %v1811_v12, %v1815_v19 }
 0x8e5   :  { %v1838_v34 = vpop.permute.xlu1 %1837 }
 0x8e6   :  { %v1822_v23 = vsub.f32 %v1820_v22, %v1821_v21 }
 0x8e8   :  { %v1823_v8 = vadd.f32 1e-05, %v1822_v23  ;;  %v2265_v23 = vld [vmem:[%s3985_s19] sm:$0xff] }
 0x8ea   :  { %3313 = vrsqrt.f32 %v1823_v8 }
 0x8f7   :  { %v3314_v26 = vpop.eup %3313 }
 0x8f8   :  { %v1826_v5 = vmul.f32 %v3314_v26, %v1825_v24 }
 0x8fa   :  { %1830 = vperm.xlu0 %3275, %v1826_v5  }
 0x975   :  { %v1831_v62 = vpop.permute.xlu0 %1830 }
 0x976   :  { %v1833_v33 = vmul.f32 %v1831_v62, %v1827_v14  ;;  %v3299_v14 = vld [vmem:[%s3976_s10] sm:$0xff]   ;;  %v2410_v62 = vld [vmem:[#allocation4 + $0x1f8] sm:$0xff] }
 0x978   :  { %v1840_v35 = vadd.f32 %v1838_v34, %v1833_v33  ;;  %v2409_v33 = vld [vmem:[#allocation4 + $0x1f0] sm:$0xff]  ;;  %v2408_v34 = vld [vmem:[#allocation4 + $0x1e8] sm:$0xff] }
 0x97a   :  { %v1841_v36 = vmax.f32 %v1840_v35, 0.0  ;;  %v2407_v35 = vld [vmem:[#allocation4 + $0x1e0] sm:$0xff] }
 0x97c   :  { %v1846_v37 = vpack.c.bf16 %v1841_v36, %v1841_v36  ;;  %v2406_v36 = vld [vmem:[#allocation4 + $0x1d8] sm:$0xff] }
 0x97e   :  { %3264 = vmatprep.subr.msk.bf16.mxu1 %vm1863_vm5, %v1846_v37  ;;  %v1865_v38 = vsel %vm1863_vm5, %v1846_v37, 0  ;;  %v2405_v37 = vld [vmem:[#allocation4 + $0x1d0] sm:$0xff] }
 0x97f   :  { %3177 = vmatpush3.bf16.msra.mxu1 %v1865_v38  ;;  %v2404_v38 = vld [vmem:[#allocation4 + $0x1c8] sm:$0xff] }
 0x980   :  { %3201 = vmatprep.subr.mxu1 %v3368_v30 }
 0x982   :  { %3179 = vmatmul.mubr.msk.bf16.vlgmr.msra.gmra.mxu1 %vm401_vm2, %v3298_v39  ;;  %v2403_v39 = vld [vmem:[#allocation4 + $0x1c0] sm:$0xff] }
 0x983   :  { %3202 = vmatpush3.msra.mxu1 %v1923_v40  ;;  %3217 = vmatprep.mubr.msk.f32.mxu1 %vm3369_vm4, %v3368_v30  ;;  %v2402_v40 = vld [vmem:[#allocation4 + $0x1b8] sm:$0xff] }
 0x984   :  { %3203 = vmatprep.subr.mxu1 %v3368_v30 }
 0x985   :  { %3204 = vmatpush3.msra.mxu1 %v1922_v41  ;;  %v2401_v41 = vld [vmem:[#allocation4 + $0x1b0] sm:$0xff] }
 0x986   :  { %3205 = vmatprep.subr.mxu1 %v3368_v30 }
 0x987   :  { %3206 = vmatpush3.msra.mxu1 %v1921_v42  ;;  %v2400_v42 = vld [vmem:[#allocation4 + $0x1a8] sm:$0xff] }
 0x988   :  { %3207 = vmatprep.subr.mxu1 %v3368_v30 }
 0x989   :  { %3208 = vmatpush3.msra.mxu1 %v1920_v43  ;;  %v2399_v43 = vld [vmem:[#allocation4 + $0x1a0] sm:$0xff] }
 0x98a   :  { %3209 = vmatprep.subr.mxu1 %v3368_v30 }
 0x98b   :  { %3210 = vmatpush3.msra.mxu1 %v1919_v44  ;;  %v2398_v44 = vld [vmem:[#allocation4 + $0x198] sm:$0xff] }
 0x98c   :  { %3211 = vmatprep.subr.mxu1 %v3368_v30 }
 0x98d   :  { %3212 = vmatpush3.msra.mxu1 %v1918_v45  ;;  %v2397_v45 = vld [vmem:[#allocation4 + $0x190] sm:$0xff] }
 0x98e   :  { %3213 = vmatprep.subr.mxu1 %v3368_v30 }
 0x98f   :  { %3214 = vmatpush3.msra.mxu1 %v1917_v46  ;;  %v2396_v46 = vld [vmem:[#allocation4 + $0x188] sm:$0xff] }
 0x990   :  { %3215 = vmatprep.subr.mxu1 %v3368_v30 }
 0x991   :  { %3216 = vmatpush3.msra.mxu1 %v1916_v48  ;;  %v2394_v48 = vld [vmem:[#allocation4 + $0x178] sm:$0xff] }
 0x992   :  { %3239 = vmatprep.subr.mxu1 %v3368_v30 }
 0xa42   :  { %v3180_v51 = vpop.f32.mrf.mxu1 }
 0xa44   :  { %v1901_v53 = vpop.f32.mrf.mxu1 }
 0xa45   :  { %3218 = vmatmul.mubr.msk.f32.vlgmr.msra.gmra.mxu1 %vm276_vm1, %v1901_v53  ;;  %v2389_v53 = vld [vmem:[#allocation4 + $0x150] sm:$0xff] }
 0xa46   :  { %3240 = vmatpush3.msra.mxu1 %v2887_v52  ;;  %v3181_v55 = vpop.f32.mrf.mxu1  ;;  %3255 = vmatprep.mubr.msk.f32.mxu1 %vm3369_vm4, %v3368_v30  ;;  %v2390_v52 = vld [vmem:[#allocation4 + $0x158] sm:$0xff] }
 0xa47   :  { %3241 = vmatprep.subr.mxu1 %v3368_v30 }
 0xa48   :  { %3242 = vmatpush3.msra.mxu1 %v2886_v54  ;;  %v1904_v58 = vpop.f32.mrf.mxu1  ;;  %v2388_v54 = vld [vmem:[#allocation4 + $0x148] sm:$0xff] }
 0xa49   :  { %3243 = vmatprep.subr.mxu1 %v3368_v30  ;;  %3199 = vmatmul.mubr.msk.f32.vlgmr.msra.gmra.mxu0 %vm276_vm1, %v1904_v58 }
 0xa4a   :  { %3221 = vmatpush3.msra.mxu0 %v2878_v56  ;;  %3244 = vmatpush3.msra.mxu1 %v2885_v57  ;;  %v2386_v56 = vld [vmem:[#allocation4 + $0x138] sm:$0xff]  ;;  %v2385_v57 = vld [vmem:[#allocation4 + $0x130] sm:$0xff] }
 0xa4b   :  { %3222 = vmatprep.subr.mxu0 %v3368_v30  ;;  %3245 = vmatprep.subr.mxu1 %v3368_v30 }
 0xa4c   :  { %3223 = vmatpush3.msra.mxu0 %v2877_v59  ;;  %3246 = vmatpush3.msra.mxu1 %v2884_v60 }
 0xa4d   :  { %3224 = vmatprep.subr.mxu0 %v3368_v30  ;;  %3247 = vmatprep.subr.mxu1 %v3368_v30 }
 0xa4e   :  { %3225 = vmatpush3.msra.mxu0 %v2876_v61  ;;  %3248 = vmatpush3.msra.mxu1 %v2883_v63 }
 0xa4f   :  { %3226 = vmatprep.subr.mxu0 %v3368_v30  ;;  %3249 = vmatprep.subr.mxu1 %v3368_v30 }
 0xa50   :  { %3227 = vmatpush3.msra.mxu0 %v2875_v0  ;;  %3250 = vmatpush3.msra.mxu1 %v2882_v1 }
 0xa51   :  { %3228 = vmatprep.subr.mxu0 %v3368_v30  ;;  %3251 = vmatprep.subr.mxu1 %v3368_v30 }
 0xa52   :  { %3229 = vmatpush3.msra.mxu0 %v2874_v2  ;;  %3252 = vmatpush3.msra.mxu1 %v2881_v3  ;;  %v2377_v2 = vld [vmem:[#allocation4 + $0xf8] sm:$0xff] }
 0xa53   :  { %3230 = vmatprep.subr.mxu0 %v3368_v30  ;;  %3253 = vmatprep.subr.mxu1 %v3368_v30 }
 0xa54   :  { %3231 = vmatpush3.msra.mxu0 %v2873_v4  ;;  %3254 = vmatpush3.msra.mxu1 %v2880_v6  ;;  %v3300_v4 = vld [vmem:[%s3976_s10 + $0x8] sm:$0xff]   ;;  %v2376_v6 = vld [vmem:[#allocation4 + $0xf0] sm:$0xff] }
 0xa55   :  { %3232 = vmatprep.subr.mxu0 %v3368_v30  ;;  %3256 = vmatmul.mubr.msk.f32.vlgmr.msra.gmra.mxu1 %vm276_vm1, %v3181_v55  ;;  %v2387_v55 = vld [vmem:[#allocation4 + $0x140] sm:$0xff] }
 0xa56   :  { %3233 = vmatpush3.msra.mxu0 %v2872_v7  ;;  %3236 = vmatprep.mubr.msk.f32.mxu0 %vm3369_vm4, %v3368_v30  ;;  %v2375_v7 = vld [vmem:[#allocation4 + $0xe8] sm:$0xff] }
 0xa57   :  { %3234 = vmatprep.subr.mxu0 %v3368_v30  ;;  %2475 = vmatprep.mubr.f32.mxu1 %v3368_v30 }
 0xa58   :  { %3235 = vmatpush3.msra.mxu0 %v2871_v9  ;;  %2411 = vmatprep.subr.mxu1 %v2410_v62  ;;  %v2374_v9 = vld [vmem:[#allocation4 + $0xe0] sm:$0xff]  ;;  %v2349_v62 = vld [vmem:[#allocation4 + $0x18] sm:$0xff] }
 0xa59   :  { %3237 = vmatmul.mubr.msk.f32.vlgmr.msra.gmra.mxu0 %vm276_vm1, %v3180_v51  ;;  %2412 = vmatpush1.msra.mxu1 %v2409_v33  ;;  %v2391_v51 = vld [vmem:[#allocation4 + $0x160] sm:$0xff]  ;;  %v2348_v33 = vld [vmem:[#allocation4 + $0x10] sm:$0xff] }
 0xa5a   :  { %3260 = vmatprep.mubr.msk.bf16.mxu0 %vm401_vm2, %v3299_v14  ;;  %2413 = vmatprep.subr.mxu1 %v2408_v34  ;;  %v2350_v14 = vld [vmem:[#allocation4 + $0x20] sm:$0xff]  ;;  %v2384_v34 = vld [vmem:[#allocation4 + $0x128] sm:$0xff] }
 0xa5b   :  { %2414 = vmatpush1.msra.mxu1 %v2407_v35  ;;  %v2347_v35 = vld [vmem:[#allocation4 + $0x8] sm:$0xff] }
 0xa5c   :  { %2415 = vmatprep.subr.mxu1 %v2406_v36  ;;  %v2383_v36 = vld [vmem:[#allocation4 + $0x120] sm:$0xff] }
 0xa5d   :  { %2416 = vmatpush1.msra.mxu1 %v2405_v37  ;;  %v2346_v37 = vld [vmem:[#allocation4] sm:$0xff] }
 0xa5e   :  { %2417 = vmatprep.subr.mxu1 %v2404_v38  ;;  %v2382_v38 = vld [vmem:[#allocation4 + $0x118] sm:$0xff] }
 0xa5f   :  { %2418 = vmatpush1.msra.mxu1 %v2403_v39  ;;  %v2691_v39 = vld [vmem:[#allocation4 + $0x3f8] sm:$0xff] }
 0xa60   :  { %2419 = vmatprep.subr.mxu1 %v2402_v40  ;;  %v2381_v40 = vld [vmem:[#allocation4 + $0x110] sm:$0xff] }
 0xa61   :  { %2420 = vmatpush1.msra.mxu1 %v2401_v41  ;;  %v2380_v41 = vld [vmem:[#allocation4 + $0x108] sm:$0xff] }
 0xa62   :  { %2421 = vmatprep.subr.mxu1 %v2400_v42  ;;  %v2379_v42 = vld [vmem:[#allocation4 + $0x100] sm:$0xff] }
 0xa63   :  { %2422 = vmatpush1.msra.mxu1 %v2399_v43  ;;  %v2585_v43 = vld [vmem:[#allocation4 + $0x2f8] sm:$0xff] }
 0xa64   :  { %2423 = vmatprep.subr.mxu1 %v2398_v44 }
 0xa65   :  { %2424 = vmatpush1.msra.mxu1 %v2397_v45  ;;  %v2690_v45 = vld [vmem:[#allocation4 + $0x3f0] sm:$0xff] }
 0xa66   :  { %2425 = vmatprep.subr.mxu1 %v2396_v46 }
 0xa67   :  { %2426 = vmatpush1.msra.mxu1 %v2395_v47  ;;  %v2689_v47 = vld [vmem:[#allocation4 + $0x3e8] sm:$0xff] }
 0xa68   :  { %2427 = vmatprep.subr.mxu1 %v2394_v48  ;;  %v2688_v48 = vld [vmem:[#allocation4 + $0x3e0] sm:$0xff] }
 0xa69   :  { %2428 = vmatpush1.msra.mxu1 %v2393_v49 }
 0xa6a   :  { %2429 = vmatprep.subr.mxu1 %v2392_v50  ;;  %v2687_v50 = vld [vmem:[#allocation4 + $0x3d8] sm:$0xff] }
 0xa6b   :  { %2430 = vmatpush1.msra.mxu1 %v2391_v51  ;;  %v2584_v51 = vld [vmem:[#allocation4 + $0x2f0] sm:$0xff] }
 0xa6c   :  { %2431 = vmatprep.subr.mxu1 %v2390_v52  ;;  %v2686_v52 = vld [vmem:[#allocation4 + $0x3d0] sm:$0xff] }
 0xa6d   :  { %2432 = vmatpush1.msra.mxu1 %v2389_v53 }
 0xa6e   :  { %2433 = vmatprep.subr.mxu1 %v2388_v54  ;;  %v2583_v54 = vld [vmem:[#allocation4 + $0x2e8] sm:$0xff] }
 0xa6f   :  { %2434 = vmatpush1.msra.mxu1 %v2387_v55  ;;  %v2685_v55 = vld [vmem:[#allocation4 + $0x3c8] sm:$0xff] }
 0xa70   :  { %2435 = vmatprep.subr.mxu1 %v2386_v56  ;;  %v2582_v56 = vld [vmem:[#allocation4 + $0x2e0] sm:$0xff] }
 0xa71   :  { %2436 = vmatpush1.msra.mxu1 %v2385_v57  ;;  %v2684_v57 = vld [vmem:[#allocation4 + $0x3c0] sm:$0xff] }
 0xa72   :  { %2437 = vmatprep.subr.mxu1 %v2384_v34  ;;  %v2664_v34 = vld [vmem:[#allocation4 + $0x320] sm:$0xff] }
 0xa73   :  { %2438 = vmatpush1.msra.mxu1 %v2383_v36  ;;  %v2663_v36 = vld [vmem:[#allocation4 + $0x318] sm:$0xff] }
 0xa74   :  { %2439 = vmatprep.subr.mxu1 %v2382_v38  ;;  %v2662_v38 = vld [vmem:[#allocation4 + $0x310] sm:$0xff] }
 0xa75   :  { %2440 = vmatpush1.msra.mxu1 %v2381_v40  ;;  %v2661_v40 = vld [vmem:[#allocation4 + $0x308] sm:$0xff] }
 0xa76   :  { %2441 = vmatprep.subr.mxu1 %v2380_v41  ;;  %v2558_v41 = vld [vmem:[#allocation4 + $0x220] sm:$0xff] }
 0xa77   :  { %2442 = vmatpush1.msra.mxu1 %v2379_v42  ;;  %v2660_v42 = vld [vmem:[#allocation4 + $0x300] sm:$0xff] }
 0xa78   :  { %2586 = vmatprep.subr.mxu1 %v2585_v43  ;;  %v2557_v43 = vld [vmem:[#allocation4 + $0x218] sm:$0xff] }
 0xb05   :  { %v2075_v10 = vpop.f32.mrf.mxu1 }
 0xb07   :  { %v3219_v11 = vpop.f32.mrf.mxu1 }
 0xb08   :  { %v2372_v11 = vld [vmem:[#allocation4 + $0xd0] sm:$0xff] }
 0xb09   :  { %v2002_v12 = vpop.f32.mrf.mxu0 }
 0xb0a   :  { %v2076_v17 = vadd.f32 %v2075_v10, %v2002_v12  ;;  %v2373_v10 = vld [vmem:[#allocation4 + $0xd8] sm:$0xff]  ;;  %v2371_v12 = vld [vmem:[#allocation4 + $0xc8] sm:$0xff] }
 0xb0b   :  { %v3200_v13 = vpop.f32.mrf.mxu0 }
 0xb0c   :  { %v2370_v13 = vld [vmem:[#allocation4 + $0xc0] sm:$0xff] }
 0xb15   :  { %v2240_v15 = vpop.f32.mrf.mxu1 }
 0xb17   :  { %v3257_v16 = vpop.f32.mrf.mxu1 }
 0xb18   :  { %v2368_v16 = vld [vmem:[#allocation4 + $0xb0] sm:$0xff] }
 0xb19   :  { %v2157_v18 = vpop.f32.mrf.mxu0 }
 0xb1a   :  { %v2161_v19 = vadd.f32 %v2157_v18, %v2076_v17  ;;  %v2367_v17 = vld [vmem:[#allocation4 + $0xa8] sm:$0xff]  ;;  %v2366_v18 = vld [vmem:[#allocation4 + $0xa0] sm:$0xff] }
 0xb1b   :  { %v3238_v20 = vpop.f32.mrf.mxu0 }
 0xb1c   :  { %v3924_v21 = vadd.f32 %v2240_v15, %v2161_v19  ;;  %v2369_v15 = vld [vmem:[#allocation4 + $0xb8] sm:$0xff]  ;;  %v2364_v20 = vld [vmem:[#allocation4 + $0x90] sm:$0xff] }
 0xb1d   :  { %v2365_v19 = vld [vmem:[#allocation4 + $0x98] sm:$0xff] }
 0xb1e   :  { %2245 = vadd.xlane.f32.xlu1 %v3924_v21  ;;  %v2248_v22 = vmul.f32 %v3924_v21, %v3924_v21 }
 0xb20   :  { %2249 = vadd.xlane.f32.xlu0 %v2248_v22  ;;  %v2362_v22 = vld [vmem:[#allocation4 + $0x80] sm:$0xff] }
 0xb2f   :  { %2268 = vperm.xlu1 %3276, %v2265_v23   ;;  %v2361_v23 = vld [vmem:[#allocation4 + $0x78] sm:$0xff] }
 0xba7   :  { %v2246_v8 = vpop.xlane.xlu1 %2245 }
 0xba8   :  { %v3932_v24 = vmul.f32 0.0078125, %v2246_v8  ;;  %v2360_v8 = vld [vmem:[#allocation4 + $0x70] sm:$0xff] }
 0xba9   :  { %v2250_v26 = vpop.xlane.xlu0 %2249 }
 0xbaa   :  { %v2252_v5 = vmul.f32 %v3932_v24, %v3932_v24  ;;  %v2251_v25 = vmul.f32 0.0078125, %v2250_v26  ;;  %v2258_v58 = vsub.f32 %v3924_v21, %v3932_v24  ;;  %v2363_v21 = vld [vmem:[#allocation4 + $0x88] sm:$0xff]  ;;  %v2358_v26 = vld [vmem:[#allocation4 + $0x60] sm:$0xff] }
 0xbab   :  { %v2269_v61 = vpop.permute.xlu1 %2268  ;;  %v2359_v24 = vld [vmem:[#allocation4 + $0x68] sm:$0xff] }
 0xbac   :  { %v2253_v27 = vsub.f32 %v2251_v25, %v2252_v5  ;;  %v2357_v5 = vld [vmem:[#allocation4 + $0x58] sm:$0xff]  ;;  %v2356_v25 = vld [vmem:[#allocation4 + $0x50] sm:$0xff] }
 0xbae   :  { %v2254_v28 = vadd.f32 1e-05, %v2253_v27  ;;  %v2355_v27 = vld [vmem:[#allocation4 + $0x48] sm:$0xff] }
 0xbb0   :  { %3315 = vrsqrt.f32 %v2254_v28  ;;  %v2354_v28 = vld [vmem:[#allocation4 + $0x40] sm:$0xff] }
 0xbbd   :  { %v3316_v31 = vpop.eup %3315 }
 0xbbe   :  { %v2257_v32 = vmul.f32 %v3316_v31, %v2256_v29  ;;  %v2353_v29 = vld [vmem:[#allocation4 + $0x38] sm:$0xff]  ;;  %v2352_v31 = vld [vmem:[#allocation4 + $0x30] sm:$0xff] }
 0xbc0   :  { %2261 = vperm.xlu0 %3275, %v2257_v32   ;;  %v2351_v32 = vld [vmem:[#allocation4 + $0x28] sm:$0xff] }
 0xc3b   :  { %v2262_v59 = vpop.permute.xlu0 %2261 }
 0xc3c   :  { %v2264_v60 = vmul.f32 %v2262_v59, %v2258_v58  ;;  %v2581_v58 = vld [vmem:[#allocation4 + $0x2d8] sm:$0xff] }
 0xc3d   :  { %v2683_v59 = vld [vmem:[#allocation4 + $0x3b8] sm:$0xff] }
 0xc3e   :  { %v2271_v63 = vadd.f32 %v2269_v61, %v2264_v60  ;;  %v2580_v60 = vld [vmem:[#allocation4 + $0x2d0] sm:$0xff] }
 0xc3f   :  { %v2682_v61 = vld [vmem:[#allocation4 + $0x3b0] sm:$0xff] }
 0xc40   :  { %v2272_v0 = vmax.f32 %v2271_v63, 0.0  ;;  %v2579_v63 = vld [vmem:[#allocation4 + $0x2c8] sm:$0xff] }
 0xc42   :  { %v2277_v1 = vpack.c.bf16 %v2272_v0, %v2272_v0  ;;  %v2681_v0 = vld [vmem:[#allocation4 + $0x3a8] sm:$0xff] }
 0xc44   :  { %3265 = vmatprep.subr.msk.bf16.mxu0 %vm1863_vm5, %v2277_v1  ;;  %v2295_v3 = vsel %vm1863_vm5, %v2277_v1, 0  ;;  %v2578_v1 = vld [vmem:[#allocation4 + $0x2c0] sm:$0xff] }
 0xc45   :  { %3259 = vmatpush3.bf16.msra.mxu0 %v2295_v3  ;;  %v2577_v3 = vld [vmem:[#allocation4 + $0x2b8] sm:$0xff] }
 0xc46   :  { %2482 = vmatprep.subr.mxu0 %v2377_v2  ;;  %v2680_v2 = vld [vmem:[#allocation4 + $0x3a0] sm:$0xff] }
 0xc48   :  { %3261 = vmatmul.mubr.msk.bf16.vlgmr.msra.gmra.mxu0 %vm401_vm2, %v3300_v4  ;;  %v2679_v4 = vld [vmem:[#allocation4 + $0x398] sm:$0xff] }
 0xc49   :  { %2483 = vmatpush1.msra.mxu0 %v2376_v6  ;;  %2546 = vmatprep.mubr.f32.mxu0 %v3368_v30  ;;  %v2576_v6 = vld [vmem:[#allocation4 + $0x2b0] sm:$0xff] }
 0xc4a   :  { %2484 = vmatprep.subr.mxu0 %v2375_v7  ;;  %v2678_v7 = vld [vmem:[#allocation4 + $0x390] sm:$0xff] }
 0xc4b   :  { %2485 = vmatpush1.msra.mxu0 %v2374_v9  ;;  %v2575_v9 = vld [vmem:[#allocation4 + $0x2a8] sm:$0xff] }
 0xc4c   :  { %2486 = vmatprep.subr.mxu0 %v2373_v10  ;;  %v2677_v10 = vld [vmem:[#allocation4 + $0x388] sm:$0xff] }
 0xc4d   :  { %2487 = vmatpush1.msra.mxu0 %v2372_v11  ;;  %v2574_v11 = vld [vmem:[#allocation4 + $0x2a0] sm:$0xff] }
 0xc4e   :  { %2488 = vmatprep.subr.mxu0 %v2371_v12  ;;  %v2676_v12 = vld [vmem:[#allocation4 + $0x380] sm:$0xff] }
 0xc4f   :  { %2489 = vmatpush1.msra.mxu0 %v2370_v13  ;;  %v2573_v13 = vld [vmem:[#allocation4 + $0x298] sm:$0xff] }
 0xc50   :  { %2490 = vmatprep.subr.mxu0 %v2369_v15  ;;  %v2675_v15 = vld [vmem:[#allocation4 + $0x378] sm:$0xff] }
 0xc51   :  { %2491 = vmatpush1.msra.mxu0 %v2368_v16  ;;  %v2572_v16 = vld [vmem:[#allocation4 + $0x290] sm:$0xff] }
 0xc52   :  { %2492 = vmatprep.subr.mxu0 %v2367_v17  ;;  %v2674_v17 = vld [vmem:[#allocation4 + $0x370] sm:$0xff] }
 0xc53   :  { %2493 = vmatpush1.msra.mxu0 %v2366_v18  ;;  %v2571_v18 = vld [vmem:[#allocation4 + $0x288] sm:$0xff] }
 0xc54   :  { %2494 = vmatprep.subr.mxu0 %v2365_v19  ;;  %v2673_v19 = vld [vmem:[#allocation4 + $0x368] sm:$0xff] }
 0xc55   :  { %2495 = vmatpush1.msra.mxu0 %v2364_v20  ;;  %v2570_v20 = vld [vmem:[#allocation4 + $0x280] sm:$0xff] }
 0xc56   :  { %2496 = vmatprep.subr.mxu0 %v2363_v21  ;;  %v2672_v21 = vld [vmem:[#allocation4 + $0x360] sm:$0xff] }
 0xc57   :  { %2497 = vmatpush1.msra.mxu0 %v2362_v22  ;;  %v2569_v22 = vld [vmem:[#allocation4 + $0x278] sm:$0xff] }
 0xc58   :  { %2498 = vmatprep.subr.mxu0 %v2361_v23  ;;  %v2671_v23 = vld [vmem:[#allocation4 + $0x358] sm:$0xff] }
 0xc59   :  { %2499 = vmatpush1.msra.mxu0 %v2360_v8  ;;  %v2568_v8 = vld [vmem:[#allocation4 + $0x270] sm:$0xff] }
 0xc5a   :  { %2500 = vmatprep.subr.mxu0 %v2359_v24  ;;  %v2670_v24 = vld [vmem:[#allocation4 + $0x350] sm:$0xff] }
 0xc5b   :  { %2501 = vmatpush1.msra.mxu0 %v2358_v26  ;;  %v2567_v26 = vld [vmem:[#allocation4 + $0x268] sm:$0xff] }
 0xc5c   :  { %2502 = vmatprep.subr.mxu0 %v2357_v5  ;;  %v2669_v5 = vld [vmem:[#allocation4 + $0x348] sm:$0xff] }
 0xc5d   :  { %2503 = vmatpush1.msra.mxu0 %v2356_v25  ;;  %v2566_v25 = vld [vmem:[#allocation4 + $0x260] sm:$0xff] }
 0xc5e   :  { %2504 = vmatprep.subr.mxu0 %v2355_v27  ;;  %v2668_v27 = vld [vmem:[#allocation4 + $0x340] sm:$0xff] }
 0xc5f   :  { %2505 = vmatpush1.msra.mxu0 %v2354_v28  ;;  %v2565_v28 = vld [vmem:[#allocation4 + $0x258] sm:$0xff] }
 0xc60   :  { %2506 = vmatprep.subr.mxu0 %v2353_v29  ;;  %v2667_v29 = vld [vmem:[#allocation4 + $0x338] sm:$0xff] }
 0xc61   :  { %2507 = vmatpush1.msra.mxu0 %v2352_v31  ;;  %v2564_v31 = vld [vmem:[#allocation4 + $0x250] sm:$0xff] }
 0xc62   :  { %2508 = vmatprep.subr.mxu0 %v2351_v32  ;;  %v2666_v32 = vld [vmem:[#allocation4 + $0x330] sm:$0xff] }
 0xc63   :  { %2509 = vmatpush1.msra.mxu0 %v2350_v14  ;;  %v2563_v14 = vld [vmem:[#allocation4 + $0x248] sm:$0xff] }
 0xc64   :  { %2510 = vmatprep.subr.mxu0 %v2349_v62  ;;  %v2665_v62 = vld [vmem:[#allocation4 + $0x328] sm:$0xff] }
 0xc65   :  { %2511 = vmatpush1.msra.mxu0 %v2348_v33  ;;  %v2562_v33 = vld [vmem:[#allocation4 + $0x240] sm:$0xff] }
 0xc66   :  { %2512 = vmatprep.subr.mxu0 %v2347_v35  ;;  %v2561_v35 = vld [vmem:[#allocation4 + $0x238] sm:$0xff] }
 0xc67   :  { %2513 = vmatpush1.msra.mxu0 %v2346_v37  ;;  %v2560_v37 = vld [vmem:[#allocation4 + $0x230] sm:$0xff] }
 0xc68   :  { %2692 = vmatprep.subr.mxu0 %v2691_v39  ;;  %v2559_v39 = vld [vmem:[#allocation4 + $0x228] sm:$0xff] }
 0xd08   :  { %v3952_v44 = vpop.f32.mrf.mxu0 }
 0xd0a   :  { %v2331_v46 = vpop.f32.mrf.mxu0 }
 0xd0b   :  { %2547 = vmatmul.mubr.f32.vlgmr.msra.gmra.mxu0 %v2331_v46  ;;  %v2555_v46 = vld [vmem:[#allocation4 + $0x208] sm:$0xff] }
 0xd0c   :  { %2693 = vmatpush1.msra.mxu0 %v2690_v45  ;;  %v3954_v49 = vpop.f32.mrf.mxu0  ;;  %2756 = vmatprep.mubr.f32.mxu0 %v3368_v30  ;;  %v2556_v45 = vld [vmem:[#allocation4 + $0x210] sm:$0xff] }
 0xd0d   :  { %2694 = vmatprep.subr.mxu0 %v2689_v47  ;;  %v2554_v47 = vld [vmem:[#allocation4 + $0x200] sm:$0xff] }
 0xd0e   :  { %2695 = vmatpush1.msra.mxu0 %v2688_v48  ;;  %v2334_v53 = vpop.f32.mrf.mxu0 }
 0xd0f   :  { %2696 = vmatprep.subr.mxu0 %v2687_v50  ;;  %2476 = vmatmul.mubr.f32.vlgmr.msra.gmra.mxu1 %v2334_v53 }
 0xd10   :  { %2587 = vmatpush1.msra.mxu1 %v2584_v51  ;;  %2697 = vmatpush1.msra.mxu0 %v2686_v52 }
 0xd11   :  { %2588 = vmatprep.subr.mxu1 %v2583_v54  ;;  %2698 = vmatprep.subr.mxu0 %v2685_v55 }
 0xd12   :  { %2589 = vmatpush1.msra.mxu1 %v2582_v56  ;;  %2699 = vmatpush1.msra.mxu0 %v2684_v57 }
 0xd13   :  { %2590 = vmatprep.subr.mxu1 %v2581_v58  ;;  %2700 = vmatprep.subr.mxu0 %v2683_v59 }
 0xd14   :  { %2591 = vmatpush1.msra.mxu1 %v2580_v60  ;;  %2701 = vmatpush1.msra.mxu0 %v2682_v61 }
 0xd15   :  { %2592 = vmatprep.subr.mxu1 %v2579_v63  ;;  %2702 = vmatprep.subr.mxu0 %v2681_v0 }
 0xd16   :  { %2593 = vmatpush1.msra.mxu1 %v2578_v1  ;;  %2703 = vmatpush1.msra.mxu0 %v2680_v2 }
 0xd17   :  { %2594 = vmatprep.subr.mxu1 %v2577_v3  ;;  %2704 = vmatprep.subr.mxu0 %v2679_v4 }
 0xd18   :  { %2595 = vmatpush1.msra.mxu1 %v2576_v6  ;;  %2705 = vmatpush1.msra.mxu0 %v2678_v7 }
 0xd19   :  { %2596 = vmatprep.subr.mxu1 %v2575_v9  ;;  %2706 = vmatprep.subr.mxu0 %v2677_v10 }
 0xd1a   :  { %2597 = vmatpush1.msra.mxu1 %v2574_v11  ;;  %2707 = vmatpush1.msra.mxu0 %v2676_v12 }
 0xd1b   :  { %2598 = vmatprep.subr.mxu1 %v2573_v13  ;;  %2708 = vmatprep.subr.mxu0 %v2675_v15 }
 0xd1c   :  { %2599 = vmatpush1.msra.mxu1 %v2572_v16  ;;  %2709 = vmatpush1.msra.mxu0 %v2674_v17 }
 0xd1d   :  { %2600 = vmatprep.subr.mxu1 %v2571_v18  ;;  %2710 = vmatprep.subr.mxu0 %v2673_v19 }
 0xd1e   :  { %2601 = vmatpush1.msra.mxu1 %v2570_v20  ;;  %2711 = vmatpush1.msra.mxu0 %v2672_v21 }
 0xd1f   :  { %2602 = vmatprep.subr.mxu1 %v2569_v22  ;;  %2712 = vmatprep.subr.mxu0 %v2671_v23 }
 0xd20   :  { %2603 = vmatpush1.msra.mxu1 %v2568_v8  ;;  %2713 = vmatpush1.msra.mxu0 %v2670_v24 }
 0xd21   :  { %2604 = vmatprep.subr.mxu1 %v2567_v26  ;;  %2714 = vmatprep.subr.mxu0 %v2669_v5 }
 0xd22   :  { %2605 = vmatpush1.msra.mxu1 %v2566_v25  ;;  %2715 = vmatpush1.msra.mxu0 %v2668_v27 }
 0xd23   :  { %2606 = vmatprep.subr.mxu1 %v2565_v28  ;;  %2716 = vmatprep.subr.mxu0 %v2667_v29 }
 0xd24   :  { %2607 = vmatpush1.msra.mxu1 %v2564_v31  ;;  %2717 = vmatpush1.msra.mxu0 %v2666_v32 }
 0xd25   :  { %2608 = vmatprep.subr.mxu1 %v2563_v14  ;;  %2718 = vmatprep.subr.mxu0 %v2665_v62 }
 0xd26   :  { %2609 = vmatpush1.msra.mxu1 %v2562_v33  ;;  %2719 = vmatpush1.msra.mxu0 %v2664_v34 }
 0xd27   :  { %2610 = vmatprep.subr.mxu1 %v2561_v35  ;;  %2720 = vmatprep.subr.mxu0 %v2663_v36 }
 0xd28   :  { %2611 = vmatpush1.msra.mxu1 %v2560_v37  ;;  %2721 = vmatpush1.msra.mxu0 %v2662_v38 }
 0xd29   :  { %2612 = vmatprep.subr.mxu1 %v2559_v39  ;;  %2722 = vmatprep.subr.mxu0 %v2661_v40 }
 0xd2a   :  { %2613 = vmatpush1.msra.mxu1 %v2558_v41  ;;  %2723 = vmatpush1.msra.mxu0 %v2660_v42 }
 0xd2b   :  { %2614 = vmatprep.subr.mxu1 %v2557_v43  ;;  %2757 = vmatmul.mubr.f32.vlgmr.msra.gmra.mxu0 %v3954_v49 }
 0xd2c   :  { %2615 = vmatpush1.msra.mxu1 %v2556_v45  ;;  %2650 = vmatprep.mubr.f32.mxu1 %v3368_v30 }
 0xd2d   :  { %2616 = vmatprep.subr.mxu1 %v2555_v46 }
 0xd2e   :  { %2617 = vmatpush1.msra.mxu1 %v2554_v47 }
 0xd2f   :  { %2651 = vmatmul.mubr.f32.vlgmr.msra.gmra.mxu1 %v3952_v44 }
 0xdcb   :  { %v2548_v50 = vpop.f32.mrf.mxu0 }
 0xdcd   :  { %v2550_v52 = vpop.f32.mrf.mxu0 }
 0xdcf   :  { %v2477_v48 = vpop.f32.mrf.mxu1 }
 0xdd0   :  { %v2549_v53 = vadd.f32 %v2548_v50, %v2477_v48 }
 0xdd1   :  { %v2479_v51 = vpop.f32.mrf.mxu1 }
 0xdd2   :  { %v2551_v56 = vadd.f32 %v2550_v52, %v2479_v51 }
 0xdeb   :  { %v2758_v54 = vpop.f32.mrf.mxu0 }
 0xded   :  { %v2760_v60 = vpop.f32.mrf.mxu0 }
 0xdef   :  { %v2652_v55 = vpop.f32.mrf.mxu1 }
 0xdf0   :  { %v2657_v57 = vadd.f32 %v2652_v55, %v2549_v53 }
 0xdf1   :  { %v2654_v58 = vpop.f32.mrf.mxu1 }
 0xdf2   :  { %v2763_v59 = vadd.f32 %v2758_v54, %v2657_v57  ;;  %v2658_v49 = vadd.f32 %v2654_v58, %v2551_v56 }
 0xdf4   :  { %2765 = vst [vmem:[%s3986_s20] sm:$0xff] %v2763_v59  ;;  %v2764_v30 = vadd.f32 %v2760_v60, %v2658_v49 }
 0xdf6   :  { %2766 = vst [vmem:[%s3986_s20 + $0x8] sm:$0xff] %v2764_v30 }
 0xdf7   :  { %2771 = vsyncpa [#allocation3], 1 }
 0xdf8   :  { %2772 = vsyncpa [#allocation5], 1 }

</bundles_post_ra>
